<compile_context>
chip_gen: v5e
topology: v5e:2x2
jax: 0.10.0
libtpu: 0.0.40
codegen_flags: <defaults>
</compile_context>

<pallas_src>
import functools

import numpy as np
import jax
import jax.numpy as jnp
from jax import lax
from jax.experimental import pallas as pl
from jax.experimental.pallas import tpu as pltpu

_NEG_BIG = -1e30   # finite sentinel: exp underflows to 0, no NaN/Inf anywhere
_LANE = 128


def _ntxent_kernel(reps_ref, posr_ref, posc_ref, out_ref,
                   m_ref, l_ref, p_ref, *,
                   tile_r, tile_c, n_real, n_pad, b, inv_temp, inv_maxd):
    qi = pl.program_id(0)          # row-tile index   (parallel)
    ki = pl.program_id(1)          # col-tile index   (arbitrary / reduction)

    @pl.when(ki == 0)
    def _init():
        m_ref[...] = jnp.full_like(m_ref, _NEG_BIG)
        l_ref[...] = jnp.zeros_like(l_ref)
        p_ref[...] = jnp.zeros_like(p_ref)

    r0 = pl.multiple_of(qi * tile_r, tile_r)
    c0 = pl.multiple_of(ki * tile_c, tile_c)

    # --- similarity tile: rows are already L2-normalized (cosine path) in the wrapper ---
    q = reps_ref[pl.ds(r0, tile_r), :]                         # (tile_r, D) f32
    k = reps_ref[pl.ds(c0, tile_c), :]                         # (tile_c, D) f32
    sim = lax.dot_general(q, k, (((1,), (1,)), ((), ())),
                          preferred_element_type=jnp.float32)  # (tile_r, tile_c)

    # --- distance weight tile (1/maxd and 1/temperature folded in), exact f32, no transposes ---
    pq = posr_ref[pl.ds(r0, tile_r), :]                        # (tile_r, 2)
    pkT = posc_ref[:, pl.ds(c0, tile_c)]                       # (2, tile_c)
    dx = pq[:, 0:1] - pkT[0:1, :]
    dy = pq[:, 1:2] - pkT[1:2, :]
    w = jnp.sqrt(dx * dx + dy * dy) * jnp.float32(inv_maxd * inv_temp)

    row_g = r0 + lax.broadcasted_iota(jnp.int32, (tile_r, tile_c), 0)
    col_g = c0 + lax.broadcasted_iota(jnp.int32, (tile_r, tile_c), 1)

    # "+ eye(B)" weight term:  i == j (mod B)  <=>  i == j  or  |i - j| == B  for i, j in [0, 2B)
    same = (row_g == col_g) | (row_g == col_g + b) | (col_g == row_g + b)
    w = w + same.astype(jnp.float32) * jnp.float32(inv_temp)

    s = sim * w                                   # weighted, temperature-scaled logits tile

    # mask self-similarity (and padded columns) with a large finite negative
    invalid = row_g == col_g
    if n_pad > n_real:
        invalid = invalid | (col_g >= n_real)
    s = jnp.where(invalid, jnp.float32(_NEG_BIG), s)

    # --- positive of global row i sits at column (i + B) mod N; exactly one hit over the sweep ---
    pos_col = jnp.where(row_g < b, row_g + b, row_g - b)
    p_ref[...] += jnp.sum(jnp.where(col_g == pos_col, s, 0.0), axis=1, keepdims=True)

    # --- online log-sum-exp accumulation over the column tiles ---
    m_prev = m_ref[...]
    m_new = jnp.maximum(m_prev, jnp.max(s, axis=1, keepdims=True))
    alpha = jnp.exp(m_prev - m_new)
    l_ref[...] = alpha * l_ref[...] + jnp.sum(jnp.exp(s - m_new), axis=1, keepdims=True)
    m_ref[...] = m_new

    # --- finalize: per-row loss = logsumexp_{j != i} s[i, j] - s[i, positive]; zero padded rows ---
    @pl.when(ki == pl.num_programs(1) - 1)
    def _finalize():
        lse = m_ref[...] + jnp.log(l_ref[...])
        loss = lse - p_ref[...]
        if n_pad > n_real:
            row1 = r0 + lax.broadcasted_iota(jnp.int32, (tile_r, 1), 0)
            loss = jnp.where(row1 < n_real, loss, 0.0)
        out_ref[...] = loss.reshape(1, tile_r, 1)


def _round_up(x, m):
    return ((x + m - 1) // m) * m


def w_ntxent_loss(zis, zjs, position, *, batch_size, temperature, shape,
                  use_cosine_similarity=True):
    B = int(batch_size)
    N = 2 * B
    D = zis.shape[-1]
    maxd = float(np.sqrt(float(shape[0]) ** 2 + float(shape[1]) ** 2))

    # representations = cat([zjs, zis], dim=0); normalize ONCE here (x / max(||x||, 1e-8))
    reps = jnp.concatenate([zjs, zis], axis=0).astype(jnp.float32)        # (N, D)
    if use_cosine_similarity:
        reps = reps * lax.rsqrt(
            jnp.maximum(jnp.sum(reps * reps, axis=-1, keepdims=True), jnp.float32(1e-16)))
    pos = position.astype(jnp.float32)
    pos_full = jnp.concatenate([pos, pos], axis=0)                        # (N, 2)

    # pad rows up to a lane-dense multiple of 128; padded rows/cols are masked inside the kernel
    n_pad = _round_up(max(N, _LANE), _LANE)
    if n_pad > N:
        reps = jnp.pad(reps, ((0, n_pad - N), (0, 0)))
        pos_full = jnp.pad(pos_full, ((0, n_pad - N), (0, 0)))
    pos_t = jnp.transpose(pos_full)                                       # (2, n_pad)

    tile_r = _LANE                                                        # lane-dense row tiles
    tile_c = next(t for t in (512, 256, 128) if n_pad % t == 0)           # wide col tiles
    nblk_r = n_pad // tile_r
    nblk_c = n_pad // tile_c

    kernel = functools.partial(
        _ntxent_kernel,
        tile_r=tile_r, tile_c=tile_c, n_real=N, n_pad=n_pad, b=B,
        inv_temp=1.0 / float(temperature), inv_maxd=1.0 / maxd)

    per_row = pl.pallas_call(
        kernel,
        out_shape=jax.ShapeDtypeStruct((nblk_r, tile_r, 1), jnp.float32),
        grid=(nblk_r, nblk_c),
        in_specs=[
            # whole (tiny) operands VMEM-resident: constant index_map => fetched once
            pl.BlockSpec((n_pad, D), lambda qi, ki: (0, 0)),   # representations (pre-normalized)
            pl.BlockSpec((n_pad, 2), lambda qi, ki: (0, 0)),   # positions, row layout
            pl.BlockSpec((2, n_pad), lambda qi, ki: (0, 0)),   # positions, transposed layout
        ],
        out_specs=pl.BlockSpec((1, tile_r, 1), lambda qi, ki: (qi, 0, 0)),
        scratch_shapes=[
            pltpu.VMEM((tile_r, 1), jnp.float32),   # running max  m
            pltpu.VMEM((tile_r, 1), jnp.float32),   # running sum  l
            pltpu.VMEM((tile_r, 1), jnp.float32),   # positive logit per row
        ],
        compiler_params=pltpu.CompilerParams(
            dimension_semantics=("parallel", "arbitrary")),
    )(reps, pos_full, pos_t)

    return jnp.sum(per_row) / jnp.float32(N)


def ref_loss(zis, zjs, position, *, batch_size, temperature, shape,
             use_cosine_similarity=True):
    """Pure numpy mirror of the PyTorch forward, used for verification (f32)."""
    B = batch_size
    N = 2 * B
    maxd = np.sqrt(float(shape[0]) ** 2 + float(shape[1]) ** 2)

    zis = np.asarray(zis, np.float32)
    zjs = np.asarray(zjs, np.float32)
    position = np.asarray(position, np.float32)

    reps = np.concatenate([zjs, zis], axis=0)               # (2B, D)
    if use_cosine_similarity:
        num = reps @ reps.T
        nrm = np.maximum(np.linalg.norm(reps, axis=-1), 1e-8)
        sim = num / (nrm[:, None] * nrm[None, :])
    else:
        sim = reps @ reps.T

    diff = position[:, None, :] - position[None, :, :]
    dist = np.sqrt(np.sum(diff ** 2, axis=-1))
    w = dist / maxd + np.eye(B, dtype=np.float32)
    w = np.tile(w, (2, 2))
    sim = sim * w

    l_pos = np.diagonal(sim, B)
    r_pos = np.diagonal(sim, -B)
    positives = np.concatenate([l_pos, r_pos]).reshape(N, 1)

    mask = (1 - (np.eye(N) + np.eye(N, N, k=-B) + np.eye(N, N, k=B))).astype(bool)
    negatives = sim[mask].reshape(N, -1)

    logits = np.concatenate([positives, negatives], axis=1) / temperature
    logits = logits - logits.max(axis=1, keepdims=True)
    logp = logits - np.log(np.sum(np.exp(logits), axis=1, keepdims=True))
    loss = -np.sum(logp[:, 0])
    return np.float32(loss / N)


if __name__ == "__main__":
    # TODO(synk): the torch forward's `step`, `epoch`, `path` args are unused logging params.
    temperature = 0.5
    img_shape = (16, 16)
    feat_dim = 32

    for cfg_idx, batch_size in enumerate((8, 24)):
        key = jax.random.fold_in(jax.random.PRNGKey(0), cfg_idx)
        k1, k2, k3 = jax.random.split(key, 3)
        zis = jax.random.normal(k1, (batch_size, feat_dim), dtype=jnp.float32)
        zjs = jax.random.normal(k2, (batch_size, feat_dim), dtype=jnp.float32)
        position = jax.random.uniform(k3, (batch_size, 2), dtype=jnp.float32,
                                      minval=0.0, maxval=float(img_shape[0]))

        loss = w_ntxent_loss(zis, zjs, position,
                             batch_size=batch_size, temperature=temperature,
                             shape=img_shape, use_cosine_similarity=True)
        loss = jax.block_until_ready(loss)

        expected = ref_loss(zis, zjs, position,
                            batch_size=batch_size, temperature=temperature,
                            shape=img_shape, use_cosine_similarity=True)

        np.testing.assert_allclose(np.asarray(loss), expected, rtol=1e-2, atol=1e-2)

    print("KERNEL_OK")
</pallas_src>

<mosaic_0001>
module attributes {stable_mosaic.version = 11 : i64} {
  func.func @_ntxent_kernel(%arg0: i32, %arg1: i32, %arg2: memref<128x32xf32, #tpu.memory_space<vmem>>, %arg3: memref<128x2xf32, #tpu.memory_space<vmem>>, %arg4: memref<2x128xf32, #tpu.memory_space<vmem>>, %arg5: memref<1x128x1xf32, #tpu.memory_space<vmem>>, %arg6: memref<128x1xf32, #tpu.memory_space<vmem>>, %arg7: memref<128x1xf32, #tpu.memory_space<vmem>>, %arg8: memref<128x1xf32, #tpu.memory_space<vmem>>) attributes {dimension_semantics = [#tpu.dimension_semantics<parallel>, #tpu.dimension_semantics<arbitrary>], iteration_bounds = array<i64: 1, 1>, scalar_prefetch = 0 : i64, scratch_operands = 3 : i64, tpu.core_type = #tpu.core_type<tc>, window_params = [{pipeline_mode = #tpu.pipeline_mode<synchronous>, transform_indices = @transform_0, window_bounds = array<i64: 128, 32>}, {pipeline_mode = #tpu.pipeline_mode<synchronous>, transform_indices = @transform_1, window_bounds = array<i64: 128, 2>}, {pipeline_mode = #tpu.pipeline_mode<synchronous>, transform_indices = @transform_2, window_bounds = array<i64: 2, 128>}, {transform_indices = @transform_3, window_bounds = array<i64: 1, 128, 1>}]} {
    %c0_i32 = arith.constant 0 : i32
    %0 = arith.cmpi eq, %arg1, %c0_i32 : i32
    %1 = arith.extui %0 : i1 to i32
    %c0_i32_0 = arith.constant 0 : i32
    %2 = arith.cmpi ne, %1, %c0_i32_0 : i32
    scf.if %2 {
      %cst_30 = arith.constant -1.000000e+30 : f32
      %93 = vector.broadcast %cst_30 : f32 to vector<128x1xf32>
      %c0_31 = arith.constant 0 : index
      %c0_32 = arith.constant 0 : index
      %94 = vector.load %arg6[%c0_31, %c0_32] : memref<128x1xf32, #tpu.memory_space<vmem>>, vector<128x1xf32>
      tpu.vector_store %arg6[%c0_31, %c0_32], %93 {strides = array<i32>} : memref<128x1xf32, #tpu.memory_space<vmem>>, vector<128x1xf32>,
      %cst_33 = arith.constant 0.000000e+00 : f32
      %95 = vector.broadcast %cst_33 : f32 to vector<128x1xf32>
      %c0_34 = arith.constant 0 : index
      %c0_35 = arith.constant 0 : index
      %96 = vector.load %arg7[%c0_34, %c0_35] : memref<128x1xf32, #tpu.memory_space<vmem>>, vector<128x1xf32>
      tpu.vector_store %arg7[%c0_34, %c0_35], %95 {strides = array<i32>} : memref<128x1xf32, #tpu.memory_space<vmem>>, vector<128x1xf32>,
      %cst_36 = arith.constant 0.000000e+00 : f32
      %97 = vector.broadcast %cst_36 : f32 to vector<128x1xf32>
      %c0_37 = arith.constant 0 : index
      %c0_38 = arith.constant 0 : index
      %98 = vector.load %arg8[%c0_37, %c0_38] : memref<128x1xf32, #tpu.memory_space<vmem>>, vector<128x1xf32>
      tpu.vector_store %arg8[%c0_37, %c0_38], %97 {strides = array<i32>} : memref<128x1xf32, #tpu.memory_space<vmem>>, vector<128x1xf32>,
    } else {
    }
    %c128_i32 = arith.constant 128 : i32
    %3 = arith.muli %arg0, %c128_i32 : i32
    %4 = tpu.assume_multiple %3, 128 : i32
    %c128_i32_1 = arith.constant 128 : i32
    %5 = arith.muli %arg1, %c128_i32_1 : i32
    %6 = tpu.assume_multiple %5, 128 : i32
    %7 = arith.index_cast %4 : i32 to index
    %c0 = arith.constant 0 : index
    %8 = vector.load %arg2[%7, %c0] : memref<128x32xf32, #tpu.memory_space<vmem>>, vector<128x32xf32>
    %9 = arith.index_cast %6 : i32 to index
    %c0_2 = arith.constant 0 : index
    %10 = vector.load %arg2[%9, %c0_2] : memref<128x32xf32, #tpu.memory_space<vmem>>, vector<128x32xf32>
    %cst = arith.constant dense<0.000000e+00> : vector<128x128xf32>
    %11 = tpu.matmul %8, %10, %cst {dimension_numbers = #tpu.dot_dimension_numbers<[1], [1], [0], [0], [0, 0, 1, 0], [], []>} : vector<128x32xf32>, vector<128x32xf32>, vector<128x128xf32> -> vector<128x128xf32>
    %12 = arith.index_cast %4 : i32 to index
    %c0_3 = arith.constant 0 : index
    %13 = vector.load %arg3[%12, %c0_3] : memref<128x2xf32, #tpu.memory_space<vmem>>, vector<128x2xf32>
    %c0_4 = arith.constant 0 : index
    %14 = arith.index_cast %6 : i32 to index
    %15 = vector.load %arg4[%c0_4, %14] : memref<2x128xf32, #tpu.memory_space<vmem>>, vector<2x128xf32>
    %16 = vector.extract_strided_slice %13 {offsets = [0, 0], sizes = [128, 1], strides = [1, 1]} : vector<128x2xf32> to vector<128x1xf32>
    %17 = vector.extract_strided_slice %15 {offsets = [0, 0], sizes = [1, 128], strides = [1, 1]} : vector<2x128xf32> to vector<1x128xf32>
    %18 = vector.broadcast %16 : vector<128x1xf32> to vector<128x128xf32>
    %19 = vector.broadcast %17 : vector<1x128xf32> to vector<128x128xf32>
    %20 = arith.subf %18, %19 : vector<128x128xf32>
    %21 = vector.extract_strided_slice %13 {offsets = [0, 1], sizes = [128, 1], strides = [1, 1]} : vector<128x2xf32> to vector<128x1xf32>
    %22 = vector.extract_strided_slice %15 {offsets = [1, 0], sizes = [1, 128], strides = [1, 1]} : vector<2x128xf32> to vector<1x128xf32>
    %23 = vector.broadcast %21 : vector<128x1xf32> to vector<128x128xf32>
    %24 = vector.broadcast %22 : vector<1x128xf32> to vector<128x128xf32>
    %25 = arith.subf %23, %24 : vector<128x128xf32>
    %26 = arith.mulf %20, %20 : vector<128x128xf32>
    %27 = arith.mulf %25, %25 : vector<128x128xf32>
    %28 = arith.addf %26, %27 : vector<128x128xf32>
    %29 = math.sqrt %28 : vector<128x128xf32>
    %cst_5 = arith.constant 0.0883883461 : f32
    %30 = vector.broadcast %cst_5 : f32 to vector<128x128xf32>
    %31 = arith.mulf %29, %30 : vector<128x128xf32>
    %32 = tpu.iota {dimensions = array<i32: 0>} : vector<128x128xi32>
    %33 = vector.broadcast %4 : i32 to vector<128x128xi32>
    %34 = arith.addi %33, %32 : vector<128x128xi32>
    %35 = tpu.iota {dimensions = array<i32: 1>} : vector<128x128xi32>
    %36 = vector.broadcast %6 : i32 to vector<128x128xi32>
    %37 = arith.addi %36, %35 : vector<128x128xi32>
    %38 = arith.cmpi eq, %34, %37 : vector<128x128xi32>
    %c8_i32 = arith.constant 8 : i32
    %39 = vector.broadcast %c8_i32 : i32 to vector<128x128xi32>
    %40 = arith.addi %37, %39 : vector<128x128xi32>
    %41 = arith.cmpi eq, %34, %40 : vector<128x128xi32>
    %42 = arith.ori %38, %41 : vector<128x128xi1>
    %c8_i32_6 = arith.constant 8 : i32
    %43 = vector.broadcast %c8_i32_6 : i32 to vector<128x128xi32>
    %44 = arith.addi %34, %43 : vector<128x128xi32>
    %45 = arith.cmpi eq, %37, %44 : vector<128x128xi32>
    %46 = arith.ori %42, %45 : vector<128x128xi1>
    %47 = arith.extui %46 : vector<128x128xi1> to vector<128x128xi32>
    %48 = arith.sitofp %47 : vector<128x128xi32> to vector<128x128xf32>
    %cst_7 = arith.constant 2.000000e+00 : f32
    %49 = vector.broadcast %cst_7 : f32 to vector<128x128xf32>
    %50 = arith.mulf %48, %49 : vector<128x128xf32>
    %51 = arith.addf %31, %50 : vector<128x128xf32>
    %52 = arith.mulf %11, %51 : vector<128x128xf32>
    %53 = arith.cmpi eq, %34, %37 : vector<128x128xi32>
    %c16_i32 = arith.constant 16 : i32
    %54 = vector.broadcast %c16_i32 : i32 to vector<128x128xi32>
    %55 = arith.cmpi sge, %37, %54 : vector<128x128xi32>
    %56 = arith.ori %53, %55 : vector<128x128xi1>
    %cst_8 = arith.constant -1.000000e+30 : f32
    %57 = vector.broadcast %cst_8 : f32 to vector<128x128xf32>
    %58 = arith.select %56, %57, %52 : vector<128x128xi1>, vector<128x128xf32>
    %c8_i32_9 = arith.constant 8 : i32
    %59 = vector.broadcast %c8_i32_9 : i32 to vector<128x128xi32>
    %60 = arith.cmpi slt, %34, %59 : vector<128x128xi32>
    %c8_i32_10 = arith.constant 8 : i32
    %61 = vector.broadcast %c8_i32_10 : i32 to vector<128x128xi32>
    %62 = arith.addi %34, %61 : vector<128x128xi32>
    %c8_i32_11 = arith.constant 8 : i32
    %63 = vector.broadcast %c8_i32_11 : i32 to vector<128x128xi32>
    %64 = arith.subi %34, %63 : vector<128x128xi32>
    %65 = arith.select %60, %62, %64 : vector<128x128xi1>, vector<128x128xi32>
    %c0_12 = arith.constant 0 : index
    %c0_13 = arith.constant 0 : index
    %66 = vector.load %arg8[%c0_12, %c0_13] : memref<128x1xf32, #tpu.memory_space<vmem>>, vector<128x1xf32>
    %67 = arith.cmpi eq, %37, %65 : vector<128x128xi32>
    %cst_14 = arith.constant 0.000000e+00 : f32
    %68 = vector.broadcast %cst_14 : f32 to vector<128x128xf32>
    %69 = arith.select %67, %58, %68 : vector<128x128xi1>, vector<128x128xf32>
    %cst_15 = arith.constant dense<0.000000e+00> : vector<128xf32>
    %70 = vector.multi_reduction <add>, %69, %cst_15 [1] : vector<128x128xf32> to vector<128xf32>
    %71 = vector.shape_cast %70 : vector<128xf32> to vector<128x1xf32>
    %72 = arith.addf %66, %71 : vector<128x1xf32>
    %c0_16 = arith.constant 0 : index
    %c0_17 = arith.constant 0 : index
    %73 = vector.load %arg8[%c0_16, %c0_17] : memref<128x1xf32, #tpu.memory_space<vmem>>, vector<128x1xf32>
    tpu.vector_store %arg8[%c0_16, %c0_17], %72 {strides = array<i32>} : memref<128x1xf32, #tpu.memory_space<vmem>>, vector<128x1xf32>,
    %c0_18 = arith.constant 0 : index
    %c0_19 = arith.constant 0 : index
    %74 = vector.load %arg6[%c0_18, %c0_19] : memref<128x1xf32, #tpu.memory_space<vmem>>, vector<128x1xf32>
    %cst_20 = arith.constant dense<0xFF800000> : vector<128xf32>
    %75 = vector.multi_reduction <maximumf>, %58, %cst_20 [1] : vector<128x128xf32> to vector<128xf32>
    %76 = vector.shape_cast %75 : vector<128xf32> to vector<128x1xf32>
    %77 = arith.maximumf %74, %76 : vector<128x1xf32>
    %78 = arith.subf %74, %77 : vector<128x1xf32>
    %79 = math.exp %78 : vector<128x1xf32>
    %c0_21 = arith.constant 0 : index
    %c0_22 = arith.constant 0 : index
    %80 = vector.load %arg7[%c0_21, %c0_22] : memref<128x1xf32, #tpu.memory_space<vmem>>, vector<128x1xf32>
    %81 = arith.mulf %79, %80 : vector<128x1xf32>
    %82 = vector.broadcast %77 : vector<128x1xf32> to vector<128x128xf32>
    %83 = arith.subf %58, %82 : vector<128x128xf32>
    %84 = math.exp %83 : vector<128x128xf32>
    %cst_23 = arith.constant dense<0.000000e+00> : vector<128xf32>
    %85 = vector.multi_reduction <add>, %84, %cst_23 [1] : vector<128x128xf32> to vector<128xf32>
    %86 = vector.shape_cast %85 : vector<128xf32> to vector<128x1xf32>
    %87 = arith.addf %81, %86 : vector<128x1xf32>
    %c0_24 = arith.constant 0 : index
    %c0_25 = arith.constant 0 : index
    %88 = vector.load %arg7[%c0_24, %c0_25] : memref<128x1xf32, #tpu.memory_space<vmem>>, vector<128x1xf32>
    tpu.vector_store %arg7[%c0_24, %c0_25], %87 {strides = array<i32>} : memref<128x1xf32, #tpu.memory_space<vmem>>, vector<128x1xf32>,
    %c0_26 = arith.constant 0 : index
    %c0_27 = arith.constant 0 : index
    %89 = vector.load %arg6[%c0_26, %c0_27] : memref<128x1xf32, #tpu.memory_space<vmem>>, vector<128x1xf32>
    tpu.vector_store %arg6[%c0_26, %c0_27], %77 {strides = array<i32>} : memref<128x1xf32, #tpu.memory_space<vmem>>, vector<128x1xf32>,
    %c0_i32_28 = arith.constant 0 : i32
    %90 = arith.cmpi eq, %arg1, %c0_i32_28 : i32
    %91 = arith.extui %90 : i1 to i32
    %c0_i32_29 = arith.constant 0 : i32
    %92 = arith.cmpi ne, %91, %c0_i32_29 : i32
    scf.if %92 {
      %c0_30 = arith.constant 0 : index
      %c0_31 = arith.constant 0 : index
      %93 = vector.load %arg6[%c0_30, %c0_31] : memref<128x1xf32, #tpu.memory_space<vmem>>, vector<128x1xf32>
      %c0_32 = arith.constant 0 : index
      %c0_33 = arith.constant 0 : index
      %94 = vector.load %arg7[%c0_32, %c0_33] : memref<128x1xf32, #tpu.memory_space<vmem>>, vector<128x1xf32>
      %95 = math.log %94 : vector<128x1xf32>
      %96 = arith.addf %93, %95 : vector<128x1xf32>
      %c0_34 = arith.constant 0 : index
      %c0_35 = arith.constant 0 : index
      %97 = vector.load %arg8[%c0_34, %c0_35] : memref<128x1xf32, #tpu.memory_space<vmem>>, vector<128x1xf32>
      %98 = arith.subf %96, %97 : vector<128x1xf32>
      %99 = tpu.iota {dimensions = array<i32: 0>} : vector<128x1xi32>
      %100 = vector.broadcast %4 : i32 to vector<128x1xi32>
      %101 = arith.addi %100, %99 : vector<128x1xi32>
      %c16_i32_36 = arith.constant 16 : i32
      %102 = vector.broadcast %c16_i32_36 : i32 to vector<128x1xi32>
      %103 = arith.cmpi slt, %101, %102 : vector<128x1xi32>
      %cst_37 = arith.constant 0.000000e+00 : f32
      %104 = vector.broadcast %cst_37 : f32 to vector<128x1xf32>
      %105 = arith.select %103, %98, %104 : vector<128x1xi1>, vector<128x1xf32>
      %106 = vector.shape_cast %105 : vector<128x1xf32> to vector<1x128x1xf32>
      %c0_38 = arith.constant 0 : index
      %c0_39 = arith.constant 0 : index
      %c0_40 = arith.constant 0 : index
      %107 = vector.load %arg5[%c0_38, %c0_39, %c0_40] : memref<1x128x1xf32, #tpu.memory_space<vmem>>, vector<1x128x1xf32>
      tpu.vector_store %arg5[%c0_38, %c0_39, %c0_40], %106 {strides = array<i32>} : memref<1x128x1xf32, #tpu.memory_space<vmem>>, vector<1x128x1xf32>,
    } else {
    }
    return
  }
  func.func @transform_0(%arg0: i32, %arg1: i32) -> (i32, i32) {
    %c0_i32 = arith.constant 0 : i32
    %c0_i32_0 = arith.constant 0 : i32
    %c0_i32_1 = arith.constant 0 : i32
    return %c0_i32, %c0_i32_0 : i32, i32
  }
  func.func @transform_1(%arg0: i32, %arg1: i32) -> (i32, i32) {
    %c0_i32 = arith.constant 0 : i32
    %c0_i32_0 = arith.constant 0 : i32
    %c0_i32_1 = arith.constant 0 : i32
    return %c0_i32, %c0_i32_0 : i32, i32
  }
  func.func @transform_2(%arg0: i32, %arg1: i32) -> (i32, i32) {
    %c0_i32 = arith.constant 0 : i32
    %c0_i32_0 = arith.constant 0 : i32
    %c0_i32_1 = arith.constant 0 : i32
    return %c0_i32, %c0_i32_0 : i32, i32
  }
  func.func @transform_3(%arg0: i32, %arg1: i32) -> (i32, i32, i32) {
    %c0_i32 = arith.constant 0 : i32
    %c0_i32_0 = arith.constant 0 : i32
    %c0_i32_1 = arith.constant 0 : i32
    return %arg0, %c0_i32, %c0_i32_0 : i32, i32, i32
  }
}

</mosaic_0001>

<bundles_post_ra>
// kernel: tpu_custom_call.1
= control target key start
LH: loop header
LB: loop body
LE: loop exit
PB: predicated region body
PF: predicated region fallthrough
CT: control target
= control target key end

     0   :  { %v1873_v0 = vmov 1   ;;  %v1874_v1 = vmov 0   ;;  %vm103_vm0 = vcmask 261120   ;;  %s3511_s1 = inlined_call_operand.vmem [shape: f32[128,2], index: 1, kind: input, shape index: {}]   ;;  %s3512_s0 = inlined_call_operand.vmem [shape: f32[128,32], index: 0, kind: input, shape index: {}]   ;;  %s3513_s2 = inlined_call_operand.vmem [shape: f32[2,128], index: 2, kind: input, shape index: {}]   ;;  %s3514_s3 = inlined_call_operand.vmem [shape: f32[1,128,1], index: 3, kind: output, shape index: {}]  }
   0x1   :  { %1769 = vset.pattern.permute.xlu0 %v1873_v0  ;;  %1766 = vset.pattern.permute.xlu2 %v1874_v1  ;;  %v1902_v2 = vld [vmem:[%s3511_s1 + $0x20] sm:$0xff]  ;;  %v268_v3 = vld [vmem:[%s3511_s1 + $0x10] sm:$0xff]  ;;  %v1910_v4 = vld [vmem:[%s3512_s0 + $0x78] sm:$0xff] }
   0x2   :  { %1765 = vset.pattern.permute.xlu1 %v1874_v1  ;;  %308 = vperm.xlu2 %1766, %v1902_v2   ;;  %v1925_v5 = vld [vmem:[%s3512_s0 + $0x70] sm:$0xff]  ;;  %v1930_v6 = vld [vmem:[%s3511_s1 + $0x28] sm:$0xff]  ;;  %v273_v7 = vld [vmem:[%s3511_s1 + $0x38] sm:$0xff] }
   0x3   :  { %392 = vperm.xlu0 %1769, %v268_v3   ;;  %298 = vperm.xlu1 %1765, %v268_v3   ;;  %v1942_v8 = vld [vmem:[%s3511_s1 + $0x18] sm:$0xff]  ;;  %v1951_v9 = vld [vmem:[%s3512_s0 + $0x68] sm:$0xff]  ;;  %v1966_v10 = vld [vmem:[%s3512_s0 + $0x60] sm:$0xff] }
   0x4   :  { %1649 = vmatpush.xpose.msk.msra.mxu0 %vm103_vm0, %v1910_v4  ;;  %1713 = vmatpush.xpose.msk.msra.mxu1 %vm103_vm0, %v1910_v4  ;;  %v1971_v11 = vld [vmem:[%s3511_s1 + $0x40] sm:$0xff]  ;;  %v276_v12 = vld [vmem:[%s3511_s1 + $0x50] sm:$0xff]  ;;  %v1987_v13 = vld [vmem:[%s3512_s0 + $0x58] sm:$0xff] }
   0x5   :  { %1714 = vmatpush.xpose.msk.msra.mxu2 %vm103_vm0, %v1910_v4  ;;  %1715 = vmatpush.xpose.msk.msra.mxu3 %vm103_vm0, %v1910_v4  ;;  %v2001_v14 = vld [vmem:[%s3512_s0 + $0x50] sm:$0xff]  ;;  %v2006_v15 = vld [vmem:[%s3511_s1 + $0x58] sm:$0xff]  ;;  %v279_v16 = vld [vmem:[%s3511_s1 + $0x68] sm:$0xff] }
   0x6   :  { %v2022_v17 = vld [vmem:[%s3512_s0 + $0x48] sm:$0xff]  ;;  %v2036_v18 = vld [vmem:[%s3512_s0 + $0x40] sm:$0xff]  ;;  %v2041_v19 = vld [vmem:[%s3511_s1 + $0x70] sm:$0xff] }
   0x7   :  { %v2054_v20 = vld [vmem:[%s3512_s0 + $0x38] sm:$0xff]  ;;  %v266_v21 = vld [vmem:[%s3511_s1] sm:$0xff]  ;;  %v2072_v22 = vld [vmem:[%s3512_s0 + $0x30] sm:$0xff] }
   0x8   :  { %1650 = vmatpush.xpose.msk.msra.mxu0 %vm103_vm0, %v1925_v5  ;;  %1716 = vmatpush.xpose.msk.msra.mxu1 %vm103_vm0, %v1925_v5  ;;  %v267_v23 = vld [vmem:[%s3511_s1 + $0x8] sm:$0xff]  ;;  %v91_v25 = vld [vmem:[%s3512_s0 + $0x20] sm:$0xff]  ;;  %v90_v26 = vld [vmem:[%s3512_s0 + $0x18] sm:$0xff] }
   0x9   :  { %1717 = vmatpush.xpose.msk.msra.mxu2 %vm103_vm0, %v1925_v5  ;;  %1718 = vmatpush.xpose.msk.msra.mxu3 %vm103_vm0, %v1925_v5  ;;  %v92_v24 = vld [vmem:[%s3512_s0 + $0x28] sm:$0xff]  ;;  %v272_v27 = vld [vmem:[%s3511_s1 + $0x30] sm:$0xff]  ;;  %v87_v31 = vld [vmem:[%s3512_s0] sm:$0xff] }
   0xa   :  { %313 = vperm.xlu2 %1766, %v1930_v6   ;;  %v89_v28 = vld [vmem:[%s3512_s0 + $0x10] sm:$0xff]  ;;  %v88_v29 = vld [vmem:[%s3512_s0 + $0x8] sm:$0xff]  ;;  %v278_v32 = vld [vmem:[%s3511_s1 + $0x60] sm:$0xff] }
   0xb   :  { %412 = vperm.xlu0 %1769, %v273_v7   ;;  %303 = vperm.xlu1 %1765, %v1942_v8   ;;  %v275_v30 = vld [vmem:[%s3511_s1 + $0x48] sm:$0xff]  ;;  %v281_v33 = vld [vmem:[%s3511_s1 + $0x78] sm:$0xff]  ;;  %v285_v37 = vld [vmem:[%s3513_s2] sm:$0x3] }
   0xc   :  { %1651 = vmatpush.xpose.msk.msra.mxu0 %vm103_vm0, %v1951_v9  ;;  %1719 = vmatpush.xpose.msk.msra.mxu1 %vm103_vm0, %v1951_v9  ;;  %v2182_v38 = vperm.slane %v285_v37, 0  ;;  %v2184_v39 = vperm.slane %v285_v37, 1 }
   0xd   :  { %1720 = vmatpush.xpose.msk.msra.mxu2 %vm103_vm0, %v1951_v9  ;;  %1721 = vmatpush.xpose.msk.msra.mxu3 %vm103_vm0, %v1951_v9 }
  0x10   :  { %1652 = vmatpush.xpose.msk.msra.mxu0 %vm103_vm0, %v1966_v10  ;;  %1722 = vmatpush.xpose.msk.msra.mxu1 %vm103_vm0, %v1966_v10 }
  0x11   :  { %1723 = vmatpush.xpose.msk.msra.mxu2 %vm103_vm0, %v1966_v10  ;;  %1724 = vmatpush.xpose.msk.msra.mxu3 %vm103_vm0, %v1966_v10 }
  0x12   :  { %328 = vperm.xlu2 %1766, %v1971_v11  }
  0x13   :  { %424 = vperm.xlu0 %1769, %v276_v12   ;;  %323 = vperm.xlu1 %1765, %v273_v7  }
  0x14   :  { %1653 = vmatpush.xpose.msk.msra.mxu0 %vm103_vm0, %v1987_v13  ;;  %1725 = vmatpush.xpose.msk.msra.mxu1 %vm103_vm0, %v1987_v13 }
  0x15   :  { %1726 = vmatpush.xpose.msk.msra.mxu2 %vm103_vm0, %v1987_v13  ;;  %1727 = vmatpush.xpose.msk.msra.mxu3 %vm103_vm0, %v1987_v13 }
  0x18   :  { %1654 = vmatpush.xpose.msk.msra.mxu0 %vm103_vm0, %v2001_v14  ;;  %1728 = vmatpush.xpose.msk.msra.mxu1 %vm103_vm0, %v2001_v14 }
  0x19   :  { %1729 = vmatpush.xpose.msk.msra.mxu2 %vm103_vm0, %v2001_v14  ;;  %1730 = vmatpush.xpose.msk.msra.mxu3 %vm103_vm0, %v2001_v14 }
  0x1a   :  { %343 = vperm.xlu2 %1766, %v2006_v15  }
  0x1b   :  { %436 = vperm.xlu0 %1769, %v279_v16   ;;  %338 = vperm.xlu1 %1765, %v276_v12   ;;  %v720_v12 = vlaneseq }
  0x1c   :  { %1655 = vmatpush.xpose.msk.msra.mxu0 %vm103_vm0, %v2022_v17  ;;  %1731 = vmatpush.xpose.msk.msra.mxu1 %vm103_vm0, %v2022_v17 }
  0x1d   :  { %1732 = vmatpush.xpose.msk.msra.mxu2 %vm103_vm0, %v2022_v17  ;;  %1733 = vmatpush.xpose.msk.msra.mxu3 %vm103_vm0, %v2022_v17 }
  0x20   :  { %1656 = vmatpush.xpose.msk.msra.mxu0 %vm103_vm0, %v2036_v18  ;;  %1734 = vmatpush.xpose.msk.msra.mxu1 %vm103_vm0, %v2036_v18 }
  0x21   :  { %1735 = vmatpush.xpose.msk.msra.mxu2 %vm103_vm0, %v2036_v18  ;;  %1736 = vmatpush.xpose.msk.msra.mxu3 %vm103_vm0, %v2036_v18 }
  0x22   :  { %358 = vperm.xlu2 %1766, %v2041_v19  }
  0x23   :  { %1770 = vset.pattern.permute.xlu0 %v1874_v1  ;;  %353 = vperm.xlu1 %1765, %v279_v16  }
  0x24   :  { %1657 = vmatpush.xpose.msk.msra.mxu0 %vm103_vm0, %v2054_v20  ;;  %1737 = vmatpush.xpose.msk.msra.mxu1 %vm103_vm0, %v2054_v20 }
  0x25   :  { %1738 = vmatpush.xpose.msk.msra.mxu2 %vm103_vm0, %v2054_v20  ;;  %1739 = vmatpush.xpose.msk.msra.mxu3 %vm103_vm0, %v2054_v20 }
  0x26   :  { %288 = vperm.xlu0 %1770, %v266_v21  }
  0x28   :  { %1658 = vmatpush.xpose.msk.msra.mxu0 %vm103_vm0, %v2072_v22  ;;  %1740 = vmatpush.xpose.msk.msra.mxu1 %vm103_vm0, %v2072_v22 }
  0x29   :  { %1741 = vmatpush.xpose.msk.msra.mxu2 %vm103_vm0, %v2072_v22  ;;  %1742 = vmatpush.xpose.msk.msra.mxu3 %vm103_vm0, %v2072_v22 }
  0x2a   :  { %1768 = vset.pattern.permute.xlu2 %v1873_v0 }
  0x2b   :  { %1767 = vset.pattern.permute.xlu1 %v1873_v0  ;;  %388 = vperm.xlu2 %1768, %v267_v23  }
  0x2c   :  { %1659 = vmatpush.xpose.msk.msra.mxu0 %vm103_vm0, %v92_v24  ;;  %1743 = vmatpush.xpose.msk.msra.mxu1 %vm103_vm0, %v92_v24 }
  0x2d   :  { %1744 = vmatpush.xpose.msk.msra.mxu2 %vm103_vm0, %v92_v24  ;;  %1745 = vmatpush.xpose.msk.msra.mxu3 %vm103_vm0, %v92_v24 }
  0x2e   :  { %293 = vperm.xlu0 %1770, %v267_v23   ;;  %384 = vperm.xlu1 %1767, %v266_v21  }
  0x30   :  { %1660 = vmatpush.xpose.msk.msra.mxu0 %vm103_vm0, %v91_v25  ;;  %1746 = vmatpush.xpose.msk.msra.mxu1 %vm103_vm0, %v91_v25 }
  0x31   :  { %1747 = vmatpush.xpose.msk.msra.mxu2 %vm103_vm0, %v91_v25  ;;  %1748 = vmatpush.xpose.msk.msra.mxu3 %vm103_vm0, %v91_v25 }
  0x33   :  { %400 = vperm.xlu2 %1768, %v1902_v2  }
  0x34   :  { %1661 = vmatpush.xpose.msk.msra.mxu0 %vm103_vm0, %v90_v26  ;;  %1749 = vmatpush.xpose.msk.msra.mxu1 %vm103_vm0, %v90_v26 }
  0x35   :  { %1750 = vmatpush.xpose.msk.msra.mxu2 %vm103_vm0, %v90_v26  ;;  %1751 = vmatpush.xpose.msk.msra.mxu3 %vm103_vm0, %v90_v26 }
  0x36   :  { %318 = vperm.xlu0 %1770, %v272_v27   ;;  %396 = vperm.xlu1 %1767, %v1942_v8  }
  0x38   :  { %1662 = vmatpush.xpose.msk.msra.mxu0 %vm103_vm0, %v89_v28  ;;  %1752 = vmatpush.xpose.msk.msra.mxu1 %vm103_vm0, %v89_v28 }
  0x39   :  { %1753 = vmatpush.xpose.msk.msra.mxu2 %vm103_vm0, %v89_v28  ;;  %1754 = vmatpush.xpose.msk.msra.mxu3 %vm103_vm0, %v89_v28 }
  0x3b   :  { %408 = vperm.xlu2 %1768, %v272_v27  }
  0x3c   :  { %1663 = vmatpush.xpose.msk.msra.mxu0 %vm103_vm0, %v88_v29  ;;  %1755 = vmatpush.xpose.msk.msra.mxu1 %vm103_vm0, %v88_v29 }
  0x3d   :  { %1756 = vmatpush.xpose.msk.msra.mxu2 %vm103_vm0, %v88_v29  ;;  %1757 = vmatpush.xpose.msk.msra.mxu3 %vm103_vm0, %v88_v29 }
  0x3e   :  { %333 = vperm.xlu0 %1770, %v275_v30   ;;  %404 = vperm.xlu1 %1767, %v1930_v6  }
  0x40   :  { %1664 = vmatpush.xpose.msk.msra.mxu0 %vm103_vm0, %v87_v31  ;;  %1758 = vmatpush.xpose.msk.msra.mxu1 %vm103_vm0, %v87_v31 }
  0x41   :  { %1759 = vmatpush.xpose.msk.msra.mxu2 %vm103_vm0, %v87_v31  ;;  %1760 = vmatpush.xpose.msk.msra.mxu3 %vm103_vm0, %v87_v31 }
  0x43   :  { %1665 = vmatmul.msk.f32.vlgmr.msra.gmra.mxu0 %vm103_vm0, %v87_v31  ;;  %1669 = vmatmul.msk.f32.vlgmr.msra.gmra.mxu1 %vm103_vm0, %v91_v25 }
  0x44   :  { %1673 = vmatmul.msk.f32.vlgmr.msra.gmra.mxu2 %vm103_vm0, %v2036_v18  ;;  %1677 = vmatmul.msk.f32.vlgmr.msra.gmra.mxu3 %vm103_vm0, %v1966_v10 }
  0x45   :  { %420 = vperm.xlu2 %1768, %v275_v30  }
  0x46   :  { %348 = vperm.xlu0 %1770, %v278_v32   ;;  %416 = vperm.xlu1 %1767, %v1971_v11  }
  0x4b   :  { %1666 = vmatmul.msk.f32.gmra.mxu0 %vm103_vm0, %v88_v29  ;;  %1670 = vmatmul.msk.f32.gmra.mxu1 %vm103_vm0, %v92_v24 }
  0x4c   :  { %1674 = vmatmul.msk.f32.gmra.mxu2 %vm103_vm0, %v2022_v17  ;;  %1678 = vmatmul.msk.f32.gmra.mxu3 %vm103_vm0, %v1951_v9 }
  0x4d   :  { %432 = vperm.xlu2 %1768, %v278_v32  }
  0x4e   :  { %363 = vperm.xlu0 %1770, %v281_v33   ;;  %428 = vperm.xlu1 %1767, %v2006_v15  }
  0x53   :  { %1667 = vmatmul.msk.f32.gmra.mxu0 %vm103_vm0, %v89_v28  ;;  %1671 = vmatmul.msk.f32.gmra.mxu1 %vm103_vm0, %v2072_v22  ;;  %v2218_v22 = vand.u32 127, %v720_v12 }
  0x54   :  { %1675 = vmatmul.msk.f32.gmra.mxu2 %vm103_vm0, %v2001_v14  ;;  %1679 = vmatmul.msk.f32.gmra.mxu3 %vm103_vm0, %v1925_v5 }
  0x55   :  { %444 = vperm.xlu2 %1768, %v281_v33   ;;  %v2226_v29 = vadd.s32 8, %v2218_v22 }
  0x56   :  { %440 = vperm.xlu1 %1767, %v2041_v19  }
  0x5b   :  { %1668 = vmatmul.msk.f32.gmra.mxu0 %vm103_vm0, %v90_v26  ;;  %1672 = vmatmul.msk.f32.gmra.mxu1 %vm103_vm0, %v2054_v20  ;;  %v2215_v20 = vshrl.u32 %v720_v12, 7 }
  0x5c   :  { %1676 = vmatmul.msk.f32.gmra.mxu2 %vm103_vm0, %v1987_v13  ;;  %1680 = vmatmul.msk.f32.gmra.mxu3 %vm103_vm0, %v1910_v4  ;;  %v309_v34 = vpop.permute.xlu2 %308 }
  0x5d   :  { %1772 = vset.pattern.permute.xlu2 %v1874_v1  ;;  %v371_v60 = vsub.f32 %v309_v34, %v2182_v38  ;;  %v2221_v25 = vadd.s32 32, %v2215_v20  ;;  %vm758_vm6 = vcmp.eq.s32.totalorder %v2215_v20, %v2218_v22 }
  0x5e   :  { %1771 = vset.pattern.permute.xlu1 %v1874_v1 }
  0x5f   :  { %v468_v4 = vmul.f32 %v371_v60, %v371_v60  ;;  %v811_v30 = vadd.s32 8, %v2221_v25  ;;  %vm762_vm1 = vcmp.eq.s32.totalorder %v2221_v25, %v2218_v22  ;;  %vm779_vm2 = vcmp.eq.s32.totalorder %v2221_v25, %v2226_v29 }
  0x60   :  { %vm795_vm3 = vmor %vm762_vm1, %vm779_vm2 }
  0x61   :  { %vm827_vm4 = vcmp.eq.s32.totalorder %v2218_v22, %v811_v30 }
  0x62   :  { %vm843_vm5 = vmor %vm795_vm3, %vm827_vm4  ;;  %vm935_vm3 = vcmp.ge.s32.totalorder %v2218_v22, 16 }
  0x64   :  { %v2175_v35 = vpop.permute.xlu2 %313 }
  0x65   :  { %v372_v34 = vsub.f32 %v2175_v35, %v2182_v38 }
  0x6c   :  { %v2177_v36 = vpop.permute.xlu2 %328 }
  0x6d   :  { %v375_v37 = vsub.f32 %v2177_v36, %v2182_v38 }
  0x74   :  { %v2186_v40 = vpop.permute.xlu2 %343 }
  0x75   :  { %v393_v41 = vpop.permute.xlu0 %392  ;;  %v299_v42 = vpop.permute.xlu1 %298 }
  0x76   :  { %v450_v43 = vsub.f32 %v393_v41, %v2184_v39  ;;  %v369_v44 = vsub.f32 %v299_v42, %v2182_v38 }
  0x78   :  { %v482_v45 = vmul.f32 %v450_v43, %v450_v43  ;;  %v466_v46 = vmul.f32 %v369_v44, %v369_v44  ;;  %v378_v43 = vsub.f32 %v2186_v40, %v2182_v38  ;;  %v2255_v40 = vmul.f32 %v372_v34, %v372_v34 }
  0x7a   :  { %v2190_v47 = vadd.f32 %v482_v45, %v466_v46  ;;  %v2252_v46 = vadd.s32 16, %v2215_v20 }
  0x7c   :  { %v2192_v48 = vpop.permute.xlu2 %358  ;;  %vm3515_vm8 = vcmp.eq.s32.totalorder %v2252_v46, %v2218_v22  ;;  %vm777_vm9 = vcmp.eq.s32.totalorder %v2252_v46, %v2226_v29  ;;  %vm543_vm4 = vcmp.eq.f32.partialorder %v2190_v47, inf }
  0x7d   :  { %v413_v49 = vpop.permute.xlu0 %412  ;;  %v2194_v50 = vpop.permute.xlu1 %303  ;;  %vm793_vm14 = vmor %vm3515_vm8, %vm777_vm9 }
  0x7e   :  { %v455_v51 = vsub.f32 %v413_v49, %v2184_v39  ;;  %vm2361_vm9 = vmor %vm762_vm1, %vm935_vm3 }
  0x80   :  { %v487_v56 = vmul.f32 %v455_v51, %v455_v51 }
  0x85   :  { %v425_v52 = vpop.permute.xlu0 %424  ;;  %v324_v53 = vpop.permute.xlu1 %323 }
  0x86   :  { %v374_v54 = vsub.f32 %v324_v53, %v2182_v38  ;;  %v389_v55 = vpop.permute.xlu2 %388  ;;  %v458_v59 = vsub.f32 %v425_v52, %v2184_v39  ;;  %v2257_v52 = vmul.f32 %v375_v37, %v375_v37 }
  0x87   :  { %v449_v45 = vsub.f32 %v389_v55, %v2184_v39  ;;  %v2263_v55 = vsub.f32 %v2192_v48, %v2182_v38 }
  0x88   :  { %v471_v57 = vmul.f32 %v374_v54, %v374_v54  ;;  %v490_v2 = vmul.f32 %v458_v59, %v458_v59  ;;  %v2259_v54 = vmul.f32 %v378_v43, %v378_v43 }
  0x89   :  { %v481_v59 = vmul.f32 %v449_v45, %v449_v45 }
  0x8a   :  { %v2198_v58 = vadd.f32 %v487_v56, %v471_v57 }
  0x8d   :  { %v339_v61 = vpop.permute.xlu1 %338  ;;  %v437_v62 = vpop.permute.xlu0 %436 }
  0x8e   :  { %v377_v63 = vsub.f32 %v339_v61, %v2182_v38  ;;  %v401_v0 = vpop.permute.xlu2 %400  ;;  %v461_v36 = vsub.f32 %v437_v62, %v2184_v39 }
  0x8f   :  { %v452_v1 = vsub.f32 %v401_v0, %v2184_v39  ;;  %v809_v0 = vadd.s32 8, %v2252_v46 }
  0x90   :  { %v474_v3 = vmul.f32 %v377_v63, %v377_v63  ;;  %v2267_v63 = vadd.s32 8, %v2215_v20 }
  0x91   :  { %v484_v5 = vmul.f32 %v452_v1, %v452_v1  ;;  %v493_v1 = vmul.f32 %v461_v36, %v461_v36  ;;  %vm825_vm10 = vcmp.eq.s32.totalorder %v2218_v22, %v809_v0 }
  0x92   :  { %v2204_v6 = vadd.f32 %v490_v2, %v474_v3  ;;  %v1875_v3 = vmov 0.0   ;;  %vm823_vm7 = vcmp.eq.s32.totalorder %v2218_v22, %v2267_v63  ;;  %vm841_vm2 = vmor %vm793_vm14, %vm825_vm10  ;;  %vm3517_vm1 = vcmp.eq.s32.totalorder %v2267_v63, %v2218_v22 }
  0x93   :  { %v2206_v7 = vadd.f32 %v484_v5, %v468_v4  ;;  %v1685_v4 = vsel %vm843_vm5, 1.0, %v1875_v3  ;;  %vm2297_vm11 = vmor %vm758_vm6, %vm823_vm7  ;;  %vm545_vm5 = vcmp.eq.f32.partialorder %v2190_v47, 0.0  ;;  %v1683_v0 = vsel %vm841_vm2, 1.0, %v1875_v3 }
  0x94   :  { %v1681_v37 = vsel %vm2297_vm11, 1.0, %v1875_v3  ;;  %vm936_vm10 = vmor %vm758_vm6, %vm935_vm3  ;;  %vm776_vm6 = vcmp.eq.s32.totalorder %v2267_v63, %v2226_v29 }
  0x95   :  { %1773 = vrsqrt.f32 %v2206_v7  ;;  %v354_v8 = vpop.permute.xlu1 %353  ;;  %vm567_vm12 = vcmp.eq.f32.partialorder %v2206_v7, inf  ;;  %vm569_vm13 = vcmp.eq.f32.partialorder %v2206_v7, 0.0 }
  0x96   :  { %1775 = vrsqrt.f32 %v2190_v47  ;;  %v2212_v15 = vpop.permute.xlu2 %408  ;;  %v380_v44 = vsub.f32 %v354_v8, %v2182_v38 }
  0x98   :  { %v289_v9 = vpop.permute.xlu0 %288  ;;  %v477_v56 = vmul.f32 %v380_v44, %v380_v44 }
  0x99   :  { %v367_v11 = vsub.f32 %v289_v9, %v2182_v38  ;;  %v2279_v9 = vsub.f32 %v2194_v50, %v2182_v38  ;;  %v2378_v50 = vmul.f32 2.0, %v1683_v0 }
  0x9b   :  { %v1774_v10 = vpop.eup %1773  ;;  %v464_v18 = vmul.f32 %v367_v11, %v367_v11 }
  0x9c   :  { %v1776_v13 = vpop.eup %1775  ;;  %v561_v14 = vmul.f32 %v1774_v10, %v2206_v7 }
  0x9d   :  { %v537_v21 = vmul.f32 %v1776_v13, %v2190_v47 }
  0x9e   :  { %v562_v23 = vmul.f32 %v1774_v10, %v561_v14 }
  0x9f   :  { %v538_v27 = vmul.f32 %v1776_v13, %v537_v21  ;;  %v421_v41 = vpop.permute.xlu2 %420 }
  0xa0   :  { %v294_v16 = vpop.permute.xlu0 %293  ;;  %v385_v17 = vpop.permute.xlu1 %384  ;;  %v563_v28 = vmul.f32 0.5, %v562_v23  ;;  %v457_v12 = vsub.f32 %v421_v41, %v2184_v39 }
  0xa1   :  { %v448_v19 = vsub.f32 %v385_v17, %v2184_v39  ;;  %v539_v33 = vmul.f32 0.5, %v538_v27  ;;  %v368_v35 = vsub.f32 %v294_v16, %v2182_v38  ;;  %v891_v17 = vmul.f32 2.0, %v1685_v4 }
  0xa2   :  { %v564_v42 = vsub.f32 1.5, %v563_v28  ;;  %v570_v27 = vand.u32 2147483648, %v2206_v7  ;;  %v489_v28 = vmul.f32 %v457_v12, %v457_v12  ;;  %v454_v4 = vsub.f32 %v2212_v15, %v2184_v39 }
  0xa3   :  { %v480_v24 = vmul.f32 %v448_v19, %v448_v19  ;;  %v540_v49 = vsub.f32 1.5, %v539_v33  ;;  %v465_v60 = vmul.f32 %v368_v35, %v368_v35  ;;  %v2367_v12 = vmul.f32 %v2263_v55, %v2263_v55 }
  0xa4   :  { %v565_v53 = vmul.f32 %v1774_v10, %v564_v42  ;;  %v2281_v10 = vadd.f32 %v493_v1, %v477_v56 }
  0xa5   :  { %v2223_v26 = vadd.f32 %v480_v24, %v464_v18  ;;  %v541_v5 = vmul.f32 %v1776_v13, %v540_v49  ;;  %v2286_v13 = vadd.f32 %v481_v59, %v465_v60  ;;  %v887_v59 = vmul.f32 2.0, %v1681_v37 }
  0xa6   :  { %v566_v8 = vmul.f32 %v565_v53, %v2206_v7 }
  0xa7   :  { %1777 = vrsqrt.f32 %v2223_v26  ;;  %v433_v14 = vpop.permute.xlu2 %432  ;;  %v542_v18 = vmul.f32 %v541_v5, %v2190_v47  ;;  %vm519_vm15 = vcmp.eq.f32.partialorder %v2223_v26, inf  ;;  %vm521_vm0 = vcmp.eq.f32.partialorder %v2223_v26, 0.0 }
  0xa8   :  { %v2230_v31 = vpop.permute.xlu0 %318  ;;  %v2232_v32 = vpop.permute.xlu1 %396  ;;  %1779 = vrsqrt.f32 %v2204_v6  ;;  %v568_v21 = vsel %vm567_vm12, %v2206_v7, %v566_v8  ;;  %v460_v23 = vsub.f32 %v433_v14, %v2184_v39  ;;  %v522_v45 = vand.u32 2147483648, %v2223_v26  ;;  %vm2430_vm12 = vmor %vm3517_vm1, %vm776_vm6 }
  0xa9   :  { %1781 = vrsqrt.f32 %v2281_v10  ;;  %v571_v43 = vsel %vm569_vm13, %v570_v27, %v568_v21  ;;  %v546_v5 = vand.u32 2147483648, %v2190_v47  ;;  %v373_v21 = vsub.f32 %v2230_v31, %v2182_v38 }
  0xaa   :  { %1783 = vrsqrt.f32 %v2286_v13  ;;  %v492_v35 = vmul.f32 %v460_v23, %v460_v23  ;;  %v708_v60 = vmul.f32 0.088388346, %v571_v43  ;;  %v2389_v23 = vadd.s32 64, %v2215_v20 }
  0xab   :  { %v470_v43 = vmul.f32 %v373_v21, %v373_v21 }
  0xac   :  { %vm766_vm13 = vcmp.eq.s32.totalorder %v2389_v23, %v2218_v22  ;;  %vm783_vm14 = vcmp.eq.s32.totalorder %v2389_v23, %v2226_v29 }
  0xad   :  { %v1778_v51 = vpop.eup %1777  ;;  %vm2465_vm2 = vmor %vm766_vm13, %vm783_vm14 }
  0xae   :  { %v513_v57 = vmul.f32 %v1778_v51, %v2223_v26  ;;  %v2331_v53 = vpop.eup %1779 }
  0xb0   :  { %v334_v61 = vpop.permute.xlu0 %333  ;;  %v405_v62 = vpop.permute.xlu1 %404  ;;  %v514_v2 = vmul.f32 %v1778_v51, %v513_v57 }
  0xb1   :  { %v376_v48 = vsub.f32 %v334_v61, %v2182_v38  ;;  %v453_v30 = vsub.f32 %v405_v62, %v2184_v39  ;;  %v2333_v61 = vpop.eup %1781 }
  0xb2   :  { %v515_v11 = vmul.f32 0.5, %v514_v2 }
  0xb3   :  { %v473_v19 = vmul.f32 %v376_v48, %v376_v48  ;;  %v485_v56 = vmul.f32 %v453_v30, %v453_v30 }
  0xb4   :  { %v516_v16 = vsub.f32 1.5, %v515_v11  ;;  %v907_v11 = vadd.f32 %v891_v17, %v708_v60  ;;  %v633_v17 = vmul.f32 %v2331_v53, %v2204_v6  ;;  %v2437_v60 = vadd.s32 104, %v2215_v20 }
  0xb5   :  { %v2323_v44 = vadd.f32 %v489_v28, %v473_v19  ;;  %v2353_v48 = vadd.f32 %v485_v56, %v2255_v40  ;;  %v2371_v40 = vmul.f32 %v2279_v9, %v2279_v9  ;;  %v808_v19 = vadd.s32 8, %v2267_v63 }
  0xb6   :  { %v517_v24 = vmul.f32 %v1778_v51, %v516_v16  ;;  %v486_v28 = vmul.f32 %v454_v4, %v454_v4  ;;  %v2422_v56 = vadd.s32 96, %v2215_v20  ;;  %vm771_vm6 = vcmp.eq.s32.totalorder %v2437_v60, %v2218_v22 }
  0xb7   :  { %1785 = vrsqrt.f32 %v2323_v44  ;;  %vm824_vm11 = vcmp.eq.s32.totalorder %v2218_v22, %v808_v19 }
  0xb8   :  { %v349_v33 = vpop.permute.xlu0 %348  ;;  %v417_v34 = vpop.permute.xlu1 %416  ;;  %v518_v42 = vmul.f32 %v517_v24, %v2223_v26 }
  0xb9   :  { %v379_v7 = vsub.f32 %v349_v33, %v2182_v38  ;;  %v456_v41 = vsub.f32 %v417_v34, %v2184_v39  ;;  %v634_v34 = vmul.f32 %v2331_v53, %v633_v17 }
  0xba   :  { %v520_v51 = vsel %vm519_vm15, %v2223_v26, %v518_v42  ;;  %v2341_v26 = vpop.eup %1783  ;;  %v678_v42 = vand.u32 2147483648, %v2281_v10 }
  0xbb   :  { %v476_v36 = vmul.f32 %v379_v7, %v379_v7  ;;  %v488_v49 = vmul.f32 %v456_v41, %v456_v41  ;;  %v523_v57 = vsel %vm521_vm0, %v522_v45, %v520_v51  ;;  %v525_v24 = vmul.f32 %v2341_v26, %v2286_v13  ;;  %vm840_vm0 = vmor %vm2430_vm12, %vm824_vm11 }
  0xbc   :  { %v704_v2 = vmul.f32 0.088388346, %v523_v57  ;;  %v669_v41 = vmul.f32 %v2333_v61, %v2281_v10  ;;  %v2445_v4 = vmul.f32 0.5, %v634_v34  ;;  %v2482_v34 = vsel %vm840_vm0, 1.0, %v1875_v3 }
  0xbd   :  { %v2335_v62 = vadd.f32 %v492_v35, %v476_v36  ;;  %v2338_v1 = vadd.f32 %v488_v49, %v2257_v52  ;;  %v544_v52 = vsel %vm543_vm4, %v2190_v47, %v542_v18  ;;  %v2393_v27 = vpop.eup %1785  ;;  %v815_v36 = vadd.s32 8, %v2389_v23 }
  0xbe   :  { %v903_v8 = vadd.f32 %v887_v59, %v704_v2  ;;  %v547_v9 = vsel %vm545_vm5, %v546_v5, %v544_v52  ;;  %v526_v49 = vmul.f32 %v2341_v26, %v525_v24  ;;  %v621_v59 = vmul.f32 %v2393_v27, %v2323_v44 }
  0xbf   :  { %1787 = vrsqrt.f32 %v2335_v62  ;;  %v2408_v31 = vmul.f32 0.088388346, %v547_v9  ;;  %v451_v5 = vsub.f32 %v2232_v32, %v2184_v39  ;;  %v670_v15 = vmul.f32 %v2333_v61, %v669_v41 }
  0xc0   :  { %1789 = vrsqrt.f32 %v2338_v1  ;;  %v217_v14 = vpop.f32.mrf.mxu0  ;;  %v229_v16 = vpop.f32.mrf.mxu1  ;;  %vm831_vm15 = vcmp.eq.s32.totalorder %v2218_v22, %v815_v36  ;;  %v527_v17 = vmul.f32 0.5, %v526_v49  ;;  %v622_v19 = vmul.f32 %v2393_v27, %v621_v59 }
  0xc1   :  { %v919_v18 = vmul.f32 %v903_v8, %v217_v14  ;;  %v923_v55 = vmul.f32 %v907_v11, %v229_v16  ;;  %1791 = vrsqrt.f32 %v2198_v58  ;;  %v2416_v45 = vpop.permute.xlu1 %428  ;;  %v2452_v11 = vadd.s32 40, %v2215_v20 }
  0xc2   :  { %1793 = vrsqrt.f32 %v2353_v48  ;;  %v2455_v14 = vadd.f32 %v486_v28, %v470_v43  ;;  %vm770_vm4 = vcmp.eq.s32.totalorder %v2422_v56, %v2218_v22  ;;  %vm787_vm5 = vcmp.eq.s32.totalorder %v2422_v56, %v2226_v29 }
  0xc3   :  { %v2398_v47 = vsel %vm2361_vm9, -1e+30, %v923_v55  ;;  %v2400_v30 = vsel %vm936_vm10, -1e+30, %v919_v18  ;;  %v819_v55 = vadd.s32 8, %v2422_v56  ;;  %v636_v41 = vsub.f32 1.5, %v2445_v4  ;;  %vm2503_vm9 = vmor %vm770_vm4, %vm787_vm5 }
  0xc4   :  { %1153 = vmax.xlane.f32.xlu1 %v2398_v47  ;;  %1145 = vmax.xlane.f32.xlu0 %v2400_v30  ;;  %v1048_v9 = vsel %vm823_vm7, %v2400_v30, 0.0  ;;  %1795 = vrsqrt.f32 %v2455_v14  ;;  %vm2493_vm7 = vmor %vm2465_vm2, %vm831_vm15  ;;  %v2498_v49 = vadd.s32 72, %v2215_v20  ;;  %v671_v36 = vmul.f32 0.5, %v670_v15 }
  0xc5   :  { %v1788_v33 = vpop.eup %1787  ;;  %vm835_vm10 = vcmp.eq.s32.totalorder %v2218_v22, %v819_v55  ;;  %vm788_vm11 = vcmp.eq.s32.totalorder %v2437_v60, %v2226_v29  ;;  %v483_v57 = vmul.f32 %v451_v5, %v451_v5  ;;  %vm3516_vm12 = vcmp.eq.s32.totalorder %v2452_v11, %v2218_v22 }
  0xc6   :  { %v1790_v37 = vpop.eup %1789  ;;  %v657_v7 = vmul.f32 %v1788_v33, %v2335_v62  ;;  %vm615_vm14 = vcmp.eq.f32.partialorder %v2338_v1, inf  ;;  %vm531_vm15 = vcmp.eq.f32.partialorder %v2286_v13, inf  ;;  %vm780_vm0 = vcmp.eq.s32.totalorder %v2452_v11, %v2226_v29  ;;  %vm2532_vm2 = vmor %vm2503_vm9, %vm835_vm10 }
  0xc7   :  { %v609_v35 = vmul.f32 %v1790_v37, %v2338_v1  ;;  %v2439_v2 = vpop.eup %1791  ;;  %v2522_v15 = vadd.s32 8, %v2452_v11  ;;  %v672_v55 = vsub.f32 1.5, %v671_v36  ;;  %vm663_vm9 = vcmp.eq.f32.partialorder %v2335_v62, inf  ;;  %vm804_vm8 = vmor %vm771_vm6, %vm788_vm11 }
  0xc8   :  { %v658_v51 = vmul.f32 %v1788_v33, %v657_v7  ;;  %v2447_v52 = vpop.eup %1793  ;;  %v2485_v7 = vadd.s32 8, %v2437_v60  ;;  %vm665_vm10 = vcmp.eq.f32.partialorder %v2335_v62, 0.0 }
  0xc9   :  { %v610_v0 = vmul.f32 %v1790_v37, %v609_v35  ;;  %v573_v24 = vmul.f32 %v2447_v52, %v2353_v48 }
  0xca   :  { %v659_v8 = vmul.f32 0.5, %v658_v51  ;;  %vm836_vm5 = vcmp.eq.s32.totalorder %v2218_v22, %v2485_v7  ;;  %v241_v7 = vpop.f32.mrf.mxu2 }
  0xcb   :  { %v611_v16 = vmul.f32 0.5, %v610_v0  ;;  %v441_v0 = vpop.permute.xlu1 %440  ;;  %vm2615_vm1 = vmor %vm804_vm8, %vm836_vm5  ;;  %vm627_vm5 = vcmp.eq.f32.partialorder %v2323_v44, inf }
  0xcc   :  { %v660_v18 = vsub.f32 1.5, %v659_v8  ;;  %1064 = vadd.xlane.f32.xlu0 %v1048_v9  ;;  %v574_v8 = vmul.f32 %v2447_v52, %v573_v24  ;;  %v2538_v9 = vadd.s32 8, %v2498_v49 }
  0xcd   :  { %v612_v21 = vsub.f32 1.5, %v611_v16 }
  0xce   :  { %v661_v28 = vmul.f32 %v1788_v33, %v660_v18  ;;  %v528_v33 = vsub.f32 1.5, %v527_v17  ;;  %v1689_v17 = vsel %vm2493_vm7, 1.0, %v1875_v3  ;;  %vm617_vm7 = vcmp.eq.f32.partialorder %v2338_v1, 0.0 }
  0xcf   :  { %v613_v43 = vmul.f32 %v1790_v37, %v612_v21  ;;  %v623_v37 = vmul.f32 0.5, %v622_v19  ;;  %v618_v19 = vand.u32 2147483648, %v2338_v1  ;;  %v462_v21 = vsub.f32 %v441_v0, %v2184_v39 }
  0xd0   :  { %v662_v16 = vmul.f32 %v661_v28, %v2335_v62  ;;  %v529_v18 = vmul.f32 %v2341_v26, %v528_v33  ;;  %v2544_v28 = vpop.eup %1795  ;;  %v1701_v26 = vadd.s32 4294967288, %v2221_v25  ;;  %v895_v33 = vmul.f32 2.0, %v1689_v17 }
  0xd1   :  { %v614_v59 = vmul.f32 %v613_v43, %v2338_v1  ;;  %v624_v24 = vsub.f32 1.5, %v623_v37  ;;  %v575_v43 = vmul.f32 0.5, %v574_v8  ;;  %v666_v37 = vand.u32 2147483648, %v2335_v62 }
  0xd2   :  { %v664_v51 = vsel %vm663_vm9, %v2335_v62, %v662_v16  ;;  %v530_v36 = vmul.f32 %v529_v18, %v2286_v13  ;;  %v494_v0 = vmul.f32 %v462_v21, %v462_v21  ;;  %v585_v8 = vmul.f32 %v2544_v28, %v2455_v14 }
  0xd3   :  { %v616_v5 = vsel %vm615_vm14, %v2338_v1, %v614_v59  ;;  %v1693_v59 = vsel %vm2532_vm2, 1.0, %v1875_v3  ;;  %vm1036_vm14 = vcmp.eq.s32.totalorder %v2218_v22, %v1701_v26  ;;  %v445_v1 = vpop.permute.xlu2 %444  ;;  %v625_v25 = vmul.f32 %v2393_v27, %v624_v24 }
  0xd4   :  { %v619_v35 = vsel %vm617_vm7, %v618_v19, %v616_v5  ;;  %vm675_vm7 = vcmp.eq.f32.partialorder %v2281_v10, inf  ;;  %v1052_v16 = vsel %vm1036_vm14, %v2398_v47, 0.0  ;;  %v667_v17 = vsel %vm665_vm10, %v666_v37, %v664_v51 }
  0xd5   :  { %v712_v5 = vmul.f32 0.088388346, %v619_v35  ;;  %v576_v32 = vsub.f32 1.5, %v575_v43  ;;  %v673_v62 = vmul.f32 %v2333_v61, %v672_v55  ;;  %1072 = vadd.xlane.f32.xlu0 %v1052_v16  ;;  %v2564_v18 = vadd.f32 %v483_v57, %v2371_v40 }
  0xd6   :  { %v534_v19 = vand.u32 2147483648, %v2286_v13  ;;  %vm767_vm2 = vcmp.eq.s32.totalorder %v2498_v49, %v2218_v22  ;;  %vm784_vm9 = vcmp.eq.s32.totalorder %v2498_v49, %v2226_v29  ;;  %v463_v27 = vsub.f32 %v445_v1, %v2184_v39 }
  0xd7   :  { %v899_v21 = vmul.f32 2.0, %v1693_v59  ;;  %v532_v24 = vsel %vm531_vm15, %v2286_v13, %v530_v36  ;;  %vm828_vm10 = vcmp.eq.s32.totalorder %v2218_v22, %v2522_v15  ;;  %vm677_vm14 = vcmp.eq.f32.partialorder %v2281_v10, 0.0  ;;  %vm2593_vm15 = vmor %vm3516_vm12, %vm780_vm0 }
  0xd8   :  { %v716_v61 = vmul.f32 0.088388346, %v667_v17  ;;  %v2585_v40 = vadd.f32 %v494_v0, %v2367_v12  ;;  %v626_v55 = vmul.f32 %v625_v25, %v2323_v44  ;;  %v586_v43 = vmul.f32 %v2544_v28, %v585_v8  ;;  %vm2603_vm11 = vmor %vm767_vm2, %vm784_vm9 }
  0xd9   :  { %v911_v26 = vadd.f32 %v895_v33, %v712_v5  ;;  %v577_v35 = vmul.f32 %v2447_v52, %v576_v32  ;;  %vm832_vm0 = vcmp.eq.s32.totalorder %v2218_v22, %v2538_v9  ;;  %v674_v51 = vmul.f32 %v673_v62, %v2281_v10  ;;  %vm844_vm8 = vmor %vm2593_vm15, %vm828_vm10  ;;  %v253_v5 = vpop.f32.mrf.mxu3 }
  0xda   :  { %vm533_vm12 = vcmp.eq.f32.partialorder %v2286_v13, 0.0  ;;  %v888_v59 = vmul.f32 2.0, %v2482_v34  ;;  %v2622_v33 = vmul.f32 %v2331_v53, %v636_v41  ;;  %v642_v37 = vand.u32 2147483648, %v2204_v6  ;;  %v364_v34 = vpop.permute.xlu0 %363  ;;  %vm944_vm15 = vmor %vm766_vm13, %vm935_vm3 }
  0xdb   :  { %1797 = vrsqrt.f32 %v2564_v18  ;;  %v495_v36 = vmul.f32 %v463_v27, %v463_v27  ;;  %v535_v13 = vsel %vm533_vm12, %v534_v19, %v532_v24  ;;  %v915_v4 = vadd.f32 %v899_v21, %v716_v61  ;;  %vm848_vm12 = vmor %vm2603_vm11, %vm832_vm0 }
  0xdc   :  { %1799 = vrsqrt.f32 %v2585_v40  ;;  %v628_v53 = vsel %vm627_vm5, %v2323_v44, %v626_v55  ;;  %v587_v41 = vmul.f32 0.5, %v586_v43  ;;  %v927_v15 = vmul.f32 %v911_v26, %v241_v7 }
  0xdd   :  { %v578_v1 = vmul.f32 %v577_v35, %v2353_v48  ;;  %v630_v0 = vand.u32 2147483648, %v2323_v44  ;;  %v676_v25 = vsel %vm675_vm7, %v2281_v10, %v674_v51  ;;  %v705_v8 = vmul.f32 0.088388346, %v535_v13 }
  0xde   :  { %vm579_vm9 = vcmp.eq.f32.partialorder %v2353_v48, inf  ;;  %v1686_v16 = vsel %vm844_vm8, 1.0, %v1875_v3  ;;  %vm629_vm10 = vcmp.eq.f32.partialorder %v2323_v44, 0.0  ;;  %v382_v9 = vsub.f32 %v364_v34, %v2182_v38  ;;  %vm2711_vm8 = vmor %vm771_vm6, %vm935_vm3 }
  0xdf   :  { %v631_v17 = vsel %vm629_vm10, %v630_v0, %v628_v53  ;;  %v1690_v32 = vsel %vm848_vm12, 1.0, %v1875_v3  ;;  %v1694_v62 = vsel %vm2615_vm1, 1.0, %v1875_v3  ;;  %v931_v19 = vmul.f32 %v915_v4, %v253_v5  ;;  %vm948_vm1 = vmor %vm770_vm4, %vm935_vm3 }
  0xe0   :  { %v679_v44 = vsel %vm677_vm14, %v678_v42, %v676_v25  ;;  %v588_v27 = vsub.f32 1.5, %v587_v41  ;;  %v2662_v21 = vadd.s32 48, %v2215_v20  ;;  %v580_v38 = vsel %vm579_vm9, %v2353_v48, %v578_v1  ;;  %v244_v1 = vpop.f32.mrf.mxu2 }
  0xe1   :  { %v2664_v24 = vpop.eup %1797  ;;  %vm581_vm13 = vcmp.eq.f32.partialorder %v2353_v48, 0.0  ;;  %v582_v61 = vand.u32 2147483648, %v2353_v48  ;;  %v2669_v57 = vsel %vm944_vm15, -1e+30, %v927_v15  ;;  %v459_v42 = vsub.f32 %v2416_v45, %v2184_v39  ;;  %v220_v39 = vpop.f32.mrf.mxu0 }
  0xe2   :  { %v2676_v10 = vpop.eup %1799  ;;  %v904_v55 = vadd.f32 %v888_v59, %v705_v8  ;;  %v713_v43 = vmul.f32 0.088388346, %v631_v17  ;;  %v896_v26 = vmul.f32 2.0, %v1690_v32  ;;  %1161 = vmax.xlane.f32.xlu2 %v2669_v57  ;;  %v479_v35 = vmul.f32 %v382_v9, %v382_v9 }
  0xe3   :  { %v717_v48 = vmul.f32 0.088388346, %v679_v44  ;;  %v900_v12 = vmul.f32 2.0, %v1694_v62  ;;  %vm639_vm7 = vcmp.eq.f32.partialorder %v2204_v6, inf  ;;  %v1705_v51 = vadd.s32 4294967288, %v2389_v23 }
  0xe4   :  { %v583_v52 = vsel %vm581_vm13, %v582_v61, %v580_v38  ;;  %v589_v13 = vmul.f32 %v2544_v28, %v588_v27  ;;  %v813_v34 = vadd.s32 8, %v2662_v21  ;;  %v2685_v7 = vsel %vm948_vm1, -1e+30, %v931_v19  ;;  %vm945_vm1 = vmor %vm767_vm2, %vm935_vm3 }
  0xe5   :  { %v2688_v45 = vadd.s32 80, %v2215_v20  ;;  %v681_v59 = vmul.f32 %v2676_v10, %v2585_v40  ;;  %v549_v4 = vmul.f32 %v2664_v24, %v2564_v18  ;;  %vm1040_vm4 = vcmp.eq.s32.totalorder %v2218_v22, %v1705_v51  ;;  %1169 = vmax.xlane.f32.xlu0 %v2685_v7 }
  0xe6   :  { %v912_v23 = vadd.f32 %v896_v26, %v713_v43  ;;  %vm764_vm14 = vcmp.eq.s32.totalorder %v2662_v21, %v2218_v22  ;;  %vm781_vm11 = vcmp.eq.s32.totalorder %v2662_v21, %v2226_v29  ;;  %vm641_vm0 = vcmp.eq.f32.partialorder %v2204_v6, 0.0 }
  0xe7   :  { %v1056_v28 = vsel %vm1040_vm4, %v2669_v57, 0.0  ;;  %v2702_v53 = vadd.f32 %v495_v36, %v479_v35  ;;  %v491_v41 = vmul.f32 %v459_v42, %v459_v42  ;;  %v892_v15 = vmul.f32 2.0, %v1686_v16  ;;  %v256_v16 = vpop.f32.mrf.mxu3  ;;  %vm2722_vm5 = vmor %vm764_vm14, %vm781_vm11  ;;  %v232_v35 = vpop.f32.mrf.mxu1 }
  0xe8   :  { %v638_v0 = vmul.f32 %v2622_v33, %v2204_v6  ;;  %1080 = vadd.xlane.f32.xlu1 %v1056_v28  ;;  %v920_v25 = vmul.f32 %v904_v55, %v220_v39  ;;  %v709_v8 = vmul.f32 0.088388346, %v583_v52  ;;  %v916_v9 = vadd.f32 %v900_v12, %v717_v48 }
  0xe9   :  { %v590_v36 = vmul.f32 %v589_v13, %v2455_v14  ;;  %vm829_vm12 = vcmp.eq.s32.totalorder %v2218_v22, %v813_v34  ;;  %v817_v17 = vadd.s32 8, %v2688_v45  ;;  %v682_v32 = vmul.f32 %v2676_v10, %v681_v59 }
  0xea   :  { %v550_v62 = vmul.f32 %v2664_v24, %v549_v4  ;;  %v928_v19 = vmul.f32 %v912_v23, %v244_v1  ;;  %vm768_vm6 = vcmp.eq.s32.totalorder %v2688_v45, %v2218_v22  ;;  %vm785_vm9 = vcmp.eq.s32.totalorder %v2688_v45, %v2226_v29  ;;  %vm2761_vm4 = vmor %vm2722_vm5, %vm829_vm12 }
  0xeb   :  { %v597_v44 = vmul.f32 %v2439_v2, %v2198_v58  ;;  %vm3542_vm10 = vcmp.eq.s32.totalorder %v2267_v63, %v2218_v22  ;;  %1801 = vrsqrt.f32 %v2702_v53  ;;  %v2747_v38 = vadd.f32 %v491_v41, %v2259_v54  ;;  %vm2771_vm2 = vmor %vm768_vm6, %vm785_vm9 }
  0xec   :  { %vm2741_vm15 = vmor %vm3542_vm10, %vm935_vm3  ;;  %vm591_vm13 = vcmp.eq.f32.partialorder %v2455_v14, inf  ;;  %v594_v61 = vand.u32 2147483648, %v2455_v14  ;;  %v908_v42 = vadd.f32 %v892_v15, %v709_v8  ;;  %v932_v55 = vmul.f32 %v916_v9, %v256_v16 }
  0xed   :  { %v592_v43 = vsel %vm591_vm13, %v2455_v14, %v590_v36  ;;  %v640_v26 = vsel %vm639_vm7, %v2204_v6, %v638_v0  ;;  %vm833_vm11 = vcmp.eq.s32.totalorder %v2218_v22, %v817_v17  ;;  %v683_v12 = vmul.f32 0.5, %v682_v32 }
  0xee   :  { %v551_v51 = vmul.f32 0.5, %v550_v62  ;;  %v1709_v52 = vadd.s32 4294967288, %v2422_v56  ;;  %vm593_vm5 = vcmp.eq.f32.partialorder %v2455_v14, 0.0  ;;  %v598_v13 = vmul.f32 %v2439_v2, %v597_v44  ;;  %vm849_vm7 = vmor %vm2771_vm2, %vm833_vm11 }
  0xef   :  { %v2781_v34 = vsel %vm2741_vm15, -1e+30, %v920_v25  ;;  %v2783_v39 = vsel %vm945_vm1, -1e+30, %v928_v19  ;;  %1803 = vrsqrt.f32 %v2747_v38  ;;  %v2788_v59 = vadd.f32 %v2378_v50, %v2408_v31  ;;  %v235_v19 = vpop.f32.mrf.mxu1 }
  0xf0   :  { %v595_v4 = vsel %vm593_vm5, %v594_v61, %v592_v43  ;;  %v643_v56 = vsel %vm641_vm0, %v642_v37, %v640_v26  ;;  %1147 = vmax.xlane.f32.xlu1 %v2781_v34  ;;  %1163 = vmax.xlane.f32.xlu0 %v2783_v39  ;;  %v2798_v14 = vsel %vm2711_vm8, -1e+30, %v932_v55  ;;  %v1687_v23 = vsel %vm2761_vm4, 1.0, %v1875_v3 }
  0xf1   :  { %v2808_v6 = vadd.s32 112, %v2215_v20  ;;  %vm1044_vm0 = vcmp.eq.s32.totalorder %v2218_v22, %v1709_v52  ;;  %v2811_v50 = vpop.eup %1801  ;;  %v924_v31 = vmul.f32 %v908_v42, %v232_v35  ;;  %v684_v37 = vsub.f32 1.5, %v683_v12 }
  0xf2   :  { %v552_v28 = vsub.f32 1.5, %v551_v51  ;;  %v1060_v41 = vsel %vm1044_vm0, %v2685_v7, 0.0  ;;  %v710_v15 = vmul.f32 0.088388346, %v595_v4  ;;  %v714_v1 = vmul.f32 0.088388346, %v643_v56 }
  0xf3   :  { %v2815_v0 = vadd.s32 24, %v2215_v20  ;;  %v599_v25 = vmul.f32 0.5, %v598_v13  ;;  %1088 = vadd.xlane.f32.xlu2 %v1060_v41  ;;  %v893_v8 = vmul.f32 2.0, %v1687_v23  ;;  %v1691_v9 = vsel %vm849_vm7, 1.0, %v1875_v3 }
  0xf4   :  { %v1698_v5 = vadd.s32 4294967288, %v2267_v63  ;;  %v1710_v36 = vadd.s32 4294967288, %v2437_v60  ;;  %vm687_vm8 = vcmp.eq.f32.partialorder %v2585_v40, inf  ;;  %vm772_vm12 = vcmp.eq.s32.totalorder %v2808_v6, %v2218_v22 }
  0xf5   :  { %vm789_vm9 = vcmp.eq.s32.totalorder %v2808_v6, %v2226_v29  ;;  %v821_v16 = vadd.s32 8, %v2808_v6  ;;  %v693_v33 = vmul.f32 %v2811_v50, %v2702_v53  ;;  %v2828_v17 = vpop.eup %1803  ;;  %v685_v32 = vmul.f32 %v2676_v10, %v684_v37 }
  0xf6   :  { %v553_v63 = vmul.f32 %v2664_v24, %v552_v28  ;;  %vm1033_vm10 = vcmp.eq.s32.totalorder %v2218_v22, %v1698_v5  ;;  %vm1045_vm15 = vcmp.eq.s32.totalorder %v2218_v22, %v1710_v36  ;;  %vm761_vm13 = vcmp.eq.s32.totalorder %v2815_v0, %v2218_v22  ;;  %vm2864_vm7 = vmor %vm772_vm12, %vm789_vm9  ;;  %v223_v28 = vpop.f32.mrf.mxu0 }
  0xf7   :  { %v600_v60 = vsub.f32 1.5, %v599_v25  ;;  %vm3549_vm1 = vcmp.eq.s32.totalorder %v2452_v11, %v2218_v22  ;;  %v1049_v10 = vsel %vm1033_vm10, %v2781_v34, 0.0  ;;  %v1061_v24 = vsel %vm1045_vm15, %v2798_v14, 0.0 }
  0xf8   :  { %vm2841_vm4 = vmor %vm3549_vm1, %vm935_vm3  ;;  %vm689_vm2 = vcmp.eq.f32.partialorder %v2585_v40, 0.0  ;;  %vm778_vm11 = vcmp.eq.s32.totalorder %v2815_v0, %v2226_v29  ;;  %v810_v44 = vadd.s32 8, %v2815_v0  ;;  %v2852_v27 = vadd.s32 56, %v2215_v20  ;;  %1066 = vadd.xlane.f32.xlu1 %v1049_v10  ;;  %1090 = vadd.xlane.f32.xlu0 %v1061_v24 }
  0xf9   :  { %v1702_v61 = vadd.s32 4294967288, %v2452_v11  ;;  %v909_v42 = vadd.f32 %v893_v8, %v710_v15  ;;  %v897_v55 = vmul.f32 2.0, %v1691_v9  ;;  %vm837_vm5 = vcmp.eq.s32.totalorder %v2218_v22, %v821_v16  ;;  %vm2882_vm0 = vmor %vm761_vm13, %vm778_vm11 }
  0xfa   :  { %v694_v43 = vmul.f32 %v2811_v50, %v693_v33  ;;  %v686_v54 = vmul.f32 %v685_v32, %v2585_v40  ;;  %v554_v11 = vmul.f32 %v553_v63, %v2564_v18  ;;  %v645_v35 = vmul.f32 %v2828_v17, %v2747_v38  ;;  %vm2898_vm1 = vmor %vm764_vm14, %vm935_vm3 }
  0xfb   :  { %v2873_v48 = vsel %vm2841_vm4, -1e+30, %v924_v31  ;;  %v925_v12 = vmul.f32 %v909_v42, %v235_v19  ;;  %v690_v51 = vand.u32 2147483648, %v2585_v40  ;;  %v601_v13 = vmul.f32 %v2439_v2, %v600_v60  ;;  %v247_v2 = vpop.f32.mrf.mxu2  ;;  %vm2906_vm4 = vmor %vm2864_vm7, %vm837_vm5 }
  0xfc   :  { %1155 = vmax.xlane.f32.xlu2 %v2873_v48  ;;  %v1706_v4 = vadd.s32 4294967288, %v2498_v49  ;;  %vm555_vm9 = vcmp.eq.f32.partialorder %v2564_v18, inf  ;;  %vm826_vm10 = vcmp.eq.s32.totalorder %v2218_v22, %v810_v44  ;;  %v814_v56 = vadd.s32 8, %v2852_v27 }
  0xfd   :  { %vm1037_vm15 = vcmp.eq.s32.totalorder %v2218_v22, %v1702_v61  ;;  %v558_v31 = vand.u32 2147483648, %v2564_v18  ;;  %vm765_vm11 = vcmp.eq.s32.totalorder %v2852_v27, %v2218_v22  ;;  %vm782_vm14 = vcmp.eq.s32.totalorder %v2852_v27, %v2226_v29  ;;  %vm2924_vm5 = vmor %vm2882_vm0, %vm826_vm10 }
  0xfe   :  { %v695_v37 = vmul.f32 0.5, %v694_v43  ;;  %v913_v41 = vadd.f32 %v897_v55, %v714_v1  ;;  %v688_v15 = vsel %vm687_vm8, %v2585_v40, %v686_v54  ;;  %v556_v25 = vsel %vm555_vm9, %v2564_v18, %v554_v11  ;;  %vm2943_vm8 = vmor %vm765_vm11, %vm782_vm14 }
  0xff   :  { %v646_v8 = vmul.f32 %v2828_v17, %v645_v35  ;;  %v602_v5 = vmul.f32 %v601_v13, %v2198_v58  ;;  %vm1041_vm7 = vcmp.eq.s32.totalorder %v2218_v22, %v1706_v4  ;;  %v1053_v1 = vsel %vm1037_vm15, %v2873_v48, 0.0  ;;  %vm946_vm9 = vmor %vm768_vm6, %vm935_vm3 }
 0x100   :  { %v2935_v36 = vsel %vm2898_vm1, -1e+30, %v925_v12  ;;  %v929_v16 = vmul.f32 %v913_v41, %v247_v2  ;;  %v1695_v33 = vsel %vm2906_vm4, 1.0, %v1875_v3  ;;  %vm830_vm0 = vcmp.eq.s32.totalorder %v2218_v22, %v814_v56  ;;  %1074 = vadd.xlane.f32.xlu1 %v1053_v1 }
 0x101   :  { %1157 = vmax.xlane.f32.xlu0 %v2935_v36  ;;  %v1707_v63 = vadd.s32 4294967288, %v2688_v45  ;;  %v691_v60 = vsel %vm689_vm2, %v690_v51, %v688_v15  ;;  %vm557_vm10 = vcmp.eq.f32.partialorder %v2564_v18, 0.0  ;;  %vm603_vm15 = vcmp.eq.f32.partialorder %v2198_v58, inf  ;;  %vm846_vm6 = vmor %vm2943_vm8, %vm830_vm0 }
 0x102   :  { %v696_v62 = vsub.f32 1.5, %v695_v37  ;;  %v559_v10 = vsel %vm557_vm10, %v558_v31, %v556_v25  ;;  %v1684_v24 = vsel %vm2924_vm5, 1.0, %v1875_v3  ;;  %v647_v19 = vmul.f32 0.5, %v646_v8  ;;  %vm939_vm10 = vmor %vm761_vm13, %vm935_vm3 }
 0x103   :  { %v1057_v44 = vsel %vm1041_vm7, %v2783_v39, 0.0  ;;  %v921_v45 = vmul.f32 %v2788_v59, %v223_v28  ;;  %v901_v61 = vmul.f32 2.0, %v1695_v33  ;;  %v604_v40 = vsel %vm603_vm15, %v2198_v58, %v602_v5  ;;  %v238_v28 = vpop.f32.mrf.mxu1 }
 0x104   :  { %1082 = vadd.xlane.f32.xlu2 %v1057_v44  ;;  %v2971_v18 = vsel %vm946_vm9, -1e+30, %v929_v16  ;;  %v718_v42 = vmul.f32 0.088388346, %v691_v60  ;;  %v606_v55 = vand.u32 2147483648, %v2198_v58  ;;  %vm1042_vm2 = vcmp.eq.s32.totalorder %v2218_v22, %v1707_v63 }
 0x105   :  { %v707_v43 = vmul.f32 0.088388346, %v559_v10  ;;  %v890_v54 = vmul.f32 2.0, %v1684_v24  ;;  %vm605_vm1 = vcmp.eq.f32.partialorder %v2198_v58, 0.0  ;;  %v697_v59 = vmul.f32 %v2811_v50, %v696_v62  ;;  %v226_v50 = vpop.f32.mrf.mxu0 }
 0x106   :  { %v607_v26 = vsel %vm605_vm1, %v606_v55, %v604_v40  ;;  %v1688_v11 = vsel %vm846_vm6, 1.0, %v1875_v3  ;;  %v648_v35 = vsub.f32 1.5, %v647_v19  ;;  %v2979_v12 = vadd.s32 120, %v2215_v20 }
 0x107   :  { %v2982_v51 = vadd.s32 88, %v2215_v20  ;;  %vm3564_vm4 = vcmp.eq.s32.totalorder %v2252_v46, %v2218_v22  ;;  %v1058_v58 = vsel %vm1042_vm2, %v2971_v18, 0.0  ;;  %v917_v52 = vadd.f32 %v901_v61, %v718_v42 }
 0x108   :  { %vm938_vm14 = vmor %vm3564_vm4, %vm935_vm3  ;;  %1171 = vmax.xlane.f32.xlu1 %v2798_v14  ;;  %v906_v13 = vadd.f32 %v890_v54, %v707_v43  ;;  %v711_v4 = vmul.f32 0.088388346, %v607_v26  ;;  %v894_v56 = vmul.f32 2.0, %v1688_v11  ;;  %v698_v23 = vmul.f32 %v697_v59, %v2702_v53  ;;  %v250_v11 = vpop.f32.mrf.mxu2 }
 0x109   :  { %1084 = vadd.xlane.f32.xlu0 %v1058_v58  ;;  %v649_v20 = vmul.f32 %v2828_v17, %v648_v35  ;;  %vm773_vm5 = vcmp.eq.s32.totalorder %v2979_v12, %v2218_v22  ;;  %vm790_vm7 = vcmp.eq.s32.totalorder %v2979_v12, %v2226_v29  ;;  %v2997_v2 = vsel %vm938_vm14, -1e+30, %v921_v45  ;;  %v259_v17 = vpop.f32.mrf.mxu3  ;;  %vm3035_vm4 = vmor %vm772_vm12, %vm935_vm3 }
 0x10a   :  { %v922_v49 = vmul.f32 %v906_v13, %v226_v50  ;;  %v818_v31 = vadd.s32 8, %v2982_v51  ;;  %v1699_v37 = vadd.s32 4294967288, %v2252_v46  ;;  %vm769_vm8 = vcmp.eq.s32.totalorder %v2982_v51, %v2218_v22  ;;  %vm806_vm15 = vmor %vm773_vm5, %vm790_vm7 }
 0x10b   :  { %vm786_vm0 = vcmp.eq.s32.totalorder %v2982_v51, %v2226_v29  ;;  %vm699_vm9 = vcmp.eq.f32.partialorder %v2702_v53, inf  ;;  %v910_v41 = vadd.f32 %v894_v56, %v711_v4  ;;  %v933_v46 = vmul.f32 %v917_v52, %v259_v17  ;;  %vm943_vm12 = vmor %vm765_vm11, %vm935_vm3 }
 0x10c   :  { %1149 = vmax.xlane.f32.xlu2 %v2997_v2  ;;  %v700_v15 = vsel %vm699_vm9, %v2702_v53, %v698_v23  ;;  %v650_v25 = vmul.f32 %v649_v20, %v2747_v38  ;;  %vm701_vm6 = vcmp.eq.f32.partialorder %v2702_v53, 0.0  ;;  %v702_v29 = vand.u32 2147483648, %v2702_v53  ;;  %vm3022_vm13 = vmor %vm769_vm8, %vm786_vm0 }
 0x10d   :  { %v926_v8 = vmul.f32 %v910_v41, %v238_v28  ;;  %vm834_vm2 = vcmp.eq.s32.totalorder %v2218_v22, %v818_v31  ;;  %vm1034_vm1 = vcmp.eq.s32.totalorder %v2218_v22, %v1699_v37  ;;  %v3028_v5 = vsel %vm939_vm10, -1e+30, %v922_v49 }
 0x10e   :  { %v703_v1 = vsel %vm701_vm6, %v702_v29, %v700_v15  ;;  %v1696_v16 = vsel %vm806_vm15, 1.0, %v1875_v3  ;;  %v1711_v33 = vadd.s32 4294967288, %v2808_v6  ;;  %v1704_v32 = vadd.s32 4294967288, %v2852_v27  ;;  %vm850_vm0 = vmor %vm3022_vm13, %vm834_vm2 }
 0x10f   :  { %vm651_vm14 = vcmp.eq.f32.partialorder %v2747_v38, inf  ;;  %vm653_vm7 = vcmp.eq.f32.partialorder %v2747_v38, 0.0  ;;  %v1050_v60 = vsel %vm1034_vm1, %v2997_v2, 0.0  ;;  %v654_v6 = vand.u32 2147483648, %v2747_v38  ;;  %vm951_vm6 = vmor %vm773_vm5, %vm935_vm3 }
 0x110   :  { %1165 = vmax.xlane.f32.xlu1 %v2971_v18  ;;  %v652_v63 = vsel %vm651_vm14, %v2747_v38, %v650_v25  ;;  %v719_v62 = vmul.f32 0.088388346, %v703_v1  ;;  %v902_v10 = vmul.f32 2.0, %v1696_v16  ;;  %v1703_v24 = vadd.s32 4294967288, %v2662_v21  ;;  %vm947_vm5 = vmor %vm769_vm8, %vm935_vm3 }
 0x111   :  { %1151 = vmax.xlane.f32.xlu0 %v3028_v5  ;;  %v3059_v27 = vsel %vm3035_vm4, -1e+30, %v933_v46  ;;  %v3061_v19 = vsel %vm943_vm12, -1e+30, %v926_v8  ;;  %vm1046_vm11 = vcmp.eq.s32.totalorder %v2218_v22, %v1711_v33  ;;  %vm1039_vm9 = vcmp.eq.s32.totalorder %v2218_v22, %v1704_v32  ;;  %v262_v55 = vpop.f32.mrf.mxu3 }
 0x112   :  { %v655_v44 = vsel %vm653_vm7, %v654_v6, %v652_v63  ;;  %v1692_v45 = vsel %vm850_vm0, 1.0, %v1875_v3  ;;  %v918_v61 = vadd.f32 %v902_v10, %v719_v62  ;;  %vm1038_vm10 = vcmp.eq.s32.totalorder %v2218_v22, %v1703_v24 }
 0x113   :  { %v1062_v38 = vsel %vm1046_vm11, %v3059_v27, 0.0  ;;  %v1055_v21 = vsel %vm1039_vm9, %v3061_v19, 0.0  ;;  %v715_v40 = vmul.f32 0.088388346, %v655_v44  ;;  %v898_v42 = vmul.f32 2.0, %v1692_v45 }
 0x114   :  { %1068 = vadd.xlane.f32.xlu2 %v1050_v60  ;;  %v1054_v43 = vsel %vm1038_vm10, %v2935_v36, 0.0  ;;  %v934_v54 = vmul.f32 %v918_v61, %v262_v55  ;;  %vm18_vm15 = vcmask 7168   ;;  %v1876_v26 = vmov -1e+30  }
 0x115   :  { %v914_v59 = vadd.f32 %v898_v42, %v715_v40  ;;  %23 = vst.msk [vmem:[#allocation2 + $0x20] sm:$0xff] %vm18_vm15, %v1876_v26  ;;  %v1708_v52 = vadd.s32 4294967288, %v2982_v51  ;;  %v1700_v50 = vadd.s32 4294967288, %v2815_v0  ;;  %v1712_v4 = vadd.s32 4294967288, %v2979_v12 }
 0x116   :  { %19 = vst.msk [vmem:[#allocation2] sm:$0xff] %vm18_vm15, %v1876_v26  ;;  %v3078_v35 = vsel %vm951_vm6, -1e+30, %v934_v54 }
 0x117   :  { %20 = vst.msk [vmem:[#allocation2 + $0x8] sm:$0xff] %vm18_vm15, %v1876_v26  ;;  %v930_v58 = vmul.f32 %v914_v59, %v250_v11  ;;  %vm1043_vm13 = vcmp.eq.s32.totalorder %v2218_v22, %v1708_v52  ;;  %vm1035_vm3 = vcmp.eq.s32.totalorder %v2218_v22, %v1700_v50  ;;  %vm1047_vm8 = vcmp.eq.s32.totalorder %v2218_v22, %v1712_v4 }
 0x118   :  { %1092 = vadd.xlane.f32.xlu1 %v1062_v38  ;;  %21 = vst.msk [vmem:[#allocation2 + $0x10] sm:$0xff] %vm18_vm15, %v1876_v26  ;;  %v1051_v0 = vsel %vm1035_vm3, %v3028_v5, 0.0  ;;  %v1063_v17 = vsel %vm1047_vm8, %v3078_v35, 0.0 }
 0x119   :  { %1078 = vadd.xlane.f32.xlu0 %v1055_v21  ;;  %22 = vst.msk [vmem:[#allocation2 + $0x18] sm:$0xff] %vm18_vm15, %v1876_v26  ;;  %v3095_v13 = vsel %vm947_vm5, -1e+30, %v930_v58 }
 0x11a   :  { %24 = vst.msk [vmem:[#allocation2 + $0x28] sm:$0xff] %vm18_vm15, %v1876_v26  ;;  %v1059_v51 = vsel %vm1043_vm13, %v3095_v13, 0.0 }
 0x11b   :  { %25 = vst.msk [vmem:[#allocation2 + $0x30] sm:$0xff] %vm18_vm15, %v1876_v26 }
 0x11c   :  { %1076 = vadd.xlane.f32.xlu2 %v1054_v43  ;;  %26 = vst.msk [vmem:[#allocation2 + $0x38] sm:$0xff] %vm18_vm15, %v1876_v26  ;;  %v3125_v56 = vld [vmem:[#allocation2 + $0x20] sm:$0xff] }
 0x11d   :  { %27 = vst.msk [vmem:[#allocation2 + $0x40] sm:$0xff] %vm18_vm15, %v1876_v26  ;;  %v3129_v23 = vld [vmem:[#allocation2] sm:$0xff] }
 0x11e   :  { %28 = vst.msk [vmem:[#allocation2 + $0x48] sm:$0xff] %vm18_vm15, %v1876_v26  ;;  %v3220_v10 = vld [vmem:[#allocation2 + $0x8] sm:$0xff] }
 0x11f   :  { %29 = vst.msk [vmem:[#allocation2 + $0x50] sm:$0xff] %vm18_vm15, %v1876_v26 }
 0x120   :  { %1159 = vmax.xlane.f32.xlu1 %v3061_v19  ;;  %30 = vst.msk [vmem:[#allocation2 + $0x58] sm:$0xff] %vm18_vm15, %v1876_v26 }
 0x121   :  { %1175 = vmax.xlane.f32.xlu0 %v3078_v35  ;;  %31 = vst.msk [vmem:[#allocation2 + $0x60] sm:$0xff] %vm18_vm15, %v1876_v26  ;;  %v3241_v58 = vld [vmem:[#allocation2 + $0x28] sm:$0xff] }
 0x122   :  { %32 = vst.msk [vmem:[#allocation2 + $0x68] sm:$0xff] %vm18_vm15, %v1876_v26 }
 0x123   :  { %33 = vst.msk [vmem:[#allocation2 + $0x70] sm:$0xff] %vm18_vm15, %v1876_v26 }
 0x124   :  { %1173 = vmax.xlane.f32.xlu2 %v3059_v27  ;;  %34 = vst.msk [vmem:[#allocation2 + $0x78] sm:$0xff] %vm18_vm15, %v1876_v26  ;;  %v3199_v8 = vld [vmem:[#allocation2 + $0x40] sm:$0xff] }
 0x125   :  { %35 = vst.msk [vmem:[#allocation3] sm:$0xff] %vm18_vm15, %v1875_v3  ;;  %v3222_v24 = vld [vmem:[#allocation2 + $0x48] sm:$0xff] }
 0x126   :  { %36 = vst.msk [vmem:[#allocation3 + $0x8] sm:$0xff] %vm18_vm15, %v1875_v3 }
 0x127   :  { %37 = vst.msk [vmem:[#allocation3 + $0x10] sm:$0xff] %vm18_vm15, %v1875_v3 }
 0x128   :  { %1086 = vadd.xlane.f32.xlu1 %v1059_v51  ;;  %38 = vst.msk [vmem:[#allocation3 + $0x18] sm:$0xff] %vm18_vm15, %v1875_v3  ;;  %v3204_v1 = vld [vmem:[#allocation2 + $0x60] sm:$0xff] }
 0x129   :  { %39 = vst.msk [vmem:[#allocation3 + $0x20] sm:$0xff] %vm18_vm15, %v1875_v3 }
 0x12a   :  { %40 = vst.msk [vmem:[#allocation3 + $0x28] sm:$0xff] %vm18_vm15, %v1875_v3 }
 0x12b   :  { %41 = vst.msk [vmem:[#allocation3 + $0x30] sm:$0xff] %vm18_vm15, %v1875_v3 }
 0x12c   :  { %1070 = vadd.xlane.f32.xlu2 %v1051_v0  ;;  %42 = vst.msk [vmem:[#allocation3 + $0x38] sm:$0xff] %vm18_vm15, %v1875_v3 }
 0x12d   :  { %43 = vst.msk [vmem:[#allocation3 + $0x40] sm:$0xff] %vm18_vm15, %v1875_v3 }
 0x12e   :  { %44 = vst.msk [vmem:[#allocation3 + $0x48] sm:$0xff] %vm18_vm15, %v1875_v3 }
 0x12f   :  { %45 = vst.msk [vmem:[#allocation3 + $0x50] sm:$0xff] %vm18_vm15, %v1875_v3 }
 0x130   :  { %46 = vst.msk [vmem:[#allocation3 + $0x58] sm:$0xff] %vm18_vm15, %v1875_v3 }
 0x131   :  { %47 = vst.msk [vmem:[#allocation3 + $0x60] sm:$0xff] %vm18_vm15, %v1875_v3 }
 0x132   :  { %48 = vst.msk [vmem:[#allocation3 + $0x68] sm:$0xff] %vm18_vm15, %v1875_v3 }
 0x133   :  { %49 = vst.msk [vmem:[#allocation3 + $0x70] sm:$0xff] %vm18_vm15, %v1875_v3 }
 0x134   :  { %1167 = vmax.xlane.f32.xlu2 %v3095_v13  ;;  %50 = vst.msk [vmem:[#allocation3 + $0x78] sm:$0xff] %vm18_vm15, %v1875_v3 }
 0x135   :  { %51 = vst.msk [vmem:[#allocation4] sm:$0xff] %vm18_vm15, %v1875_v3 }
 0x136   :  { %52 = vst.msk [vmem:[#allocation4 + $0x8] sm:$0xff] %vm18_vm15, %v1875_v3 }
 0x137   :  { %v1154_v20 = vpop.xlane.xlu1 %1153  ;;  %v1146_v49 = vpop.xlane.xlu0 %1145  ;;  %53 = vst.msk [vmem:[#allocation4 + $0x10] sm:$0xff] %vm18_vm15, %v1875_v3 }
 0x138   :  { %v3136_v31 = vmax.f32 %v3125_v56, %v1154_v20  ;;  %v3141_v12 = vmax.f32 %v3129_v23, %v1146_v49  ;;  %54 = vst.msk [vmem:[#allocation4 + $0x18] sm:$0xff] %vm18_vm15, %v1875_v3  ;;  %v3253_v49 = vld [vmem:[#allocation2 + $0x30] sm:$0xff] }
 0x139   :  { %55 = vst.msk [vmem:[#allocation4 + $0x20] sm:$0xff] %vm18_vm15, %v1875_v3 }
 0x13a   :  { %1469 = vst.msk [vmem:[#allocation2 + $0x20] sm:$0xff] %vm18_vm15, %v3136_v31  ;;  %v1193_v28 = vsub.f32 %v3129_v23, %v3141_v12  ;;  %v1249_v23 = vld [vmem:[#allocation3 + $0x40] sm:$0xff] }
 0x13b   :  { %56 = vst.msk [vmem:[#allocation4 + $0x28] sm:$0xff] %vm18_vm15, %v1875_v3 }
 0x13c   :  { %1094 = vadd.xlane.f32.xlu2 %v1063_v17  ;;  %57 = vst.msk [vmem:[#allocation4 + $0x30] sm:$0xff] %vm18_vm15, %v1875_v3  ;;  %v1016_v41 = vld [vmem:[#allocation4] sm:$0xff] }
 0x13d   :  { %58 = vst.msk [vmem:[#allocation4 + $0x38] sm:$0xff] %vm18_vm15, %v1875_v3  ;;  %v1017_v54 = vld [vmem:[#allocation4 + $0x8] sm:$0xff] }
 0x13e   :  { %59 = vst.msk [vmem:[#allocation4 + $0x40] sm:$0xff] %vm18_vm15, %v1875_v3 }
 0x13f   :  { %v1065_v22 = vpop.xlane.xlu0 %1064  ;;  %60 = vst.msk [vmem:[#allocation4 + $0x48] sm:$0xff] %vm18_vm15, %v1875_v3 }
 0x140   :  { %61 = vst.msk [vmem:[#allocation4 + $0x50] sm:$0xff] %vm18_vm15, %v1875_v3  ;;  %v1020_v15 = vld [vmem:[#allocation4 + $0x20] sm:$0xff]  ;;  %v1096_v25 = vadd.f32 %v1065_v22, %v1016_v41 }
 0x141   :  { %1275 = vperm.xlu1 %1771, %v3141_v12   ;;  %62 = vst.msk [vmem:[#allocation4 + $0x58] sm:$0xff] %vm18_vm15, %v1875_v3 }
 0x142   :  { %63 = vst.msk [vmem:[#allocation4 + $0x60] sm:$0xff] %vm18_vm15, %v1875_v3  ;;  %v1021_v20 = vld [vmem:[#allocation4 + $0x28] sm:$0xff] }
 0x143   :  { %64 = vst.msk [vmem:[#allocation4 + $0x68] sm:$0xff] %vm18_vm15, %v1875_v3 }
 0x144   :  { %65 = vst.msk [vmem:[#allocation4 + $0x70] sm:$0xff] %vm18_vm15, %v1875_v3 }
 0x145   :  { %66 = vst.msk [vmem:[#allocation4 + $0x78] sm:$0xff] %vm18_vm15, %v1875_v3  ;;  %v1024_v33 = vld [vmem:[#allocation4 + $0x40] sm:$0xff] }
 0x146   :  { %1465 = vst.msk [vmem:[#allocation2] sm:$0xff] %vm18_vm15, %v3141_v12  ;;  %v1025_v41 = vld [vmem:[#allocation4 + $0x48] sm:$0xff] }
 0x147   :  { %1113 = vst.msk [vmem:[#allocation4] sm:$0xff] %vm18_vm15, %v1096_v25 }
 0x148   :  { %v1073_v46 = vpop.xlane.xlu0 %1072  ;;  %1630 = vst.msk [vmem:[%s3514_s3 + $0x10] sm:$0xff] %vm18_vm15, %v1875_v3 }
 0x149   :  { %v1100_v29 = vadd.f32 %v1073_v46, %v1020_v15  ;;  %v1028_v61 = vld [vmem:[#allocation4 + $0x60] sm:$0xff]  ;;  %1631 = vst.msk [vmem:[%s3514_s3 + $0x18] sm:$0xff] %vm18_vm15, %v1875_v3 }
 0x14a   :  { %v1029_v59 = vld [vmem:[#allocation4 + $0x68] sm:$0xff]  ;;  %1632 = vst.msk [vmem:[%s3514_s3 + $0x20] sm:$0xff] %vm18_vm15, %v1875_v3 }
 0x14b   :  { %1117 = vst.msk [vmem:[#allocation4 + $0x20] sm:$0xff] %vm18_vm15, %v1100_v29 }
 0x14c   :  { %1633 = vst.msk [vmem:[%s3514_s3 + $0x28] sm:$0xff] %vm18_vm15, %v1875_v3 }
 0x14d   :  { %1634 = vst.msk [vmem:[%s3514_s3 + $0x30] sm:$0xff] %vm18_vm15, %v1875_v3 }
 0x14e   :  { %1635 = vst.msk [vmem:[%s3514_s3 + $0x38] sm:$0xff] %vm18_vm15, %v1875_v3 }
 0x14f   :  { %1636 = vst.msk [vmem:[%s3514_s3 + $0x40] sm:$0xff] %vm18_vm15, %v1875_v3 }
 0x150   :  { %1637 = vst.msk [vmem:[%s3514_s3 + $0x48] sm:$0xff] %vm18_vm15, %v1875_v3 }
 0x151   :  { %1638 = vst.msk [vmem:[%s3514_s3 + $0x50] sm:$0xff] %vm18_vm15, %v1875_v3 }
 0x152   :  { %1639 = vst.msk [vmem:[%s3514_s3 + $0x58] sm:$0xff] %vm18_vm15, %v1875_v3 }
 0x153   :  { %1640 = vst.msk [vmem:[%s3514_s3 + $0x60] sm:$0xff] %vm18_vm15, %v1875_v3 }
 0x154   :  { %1295 = vperm.xlu2 %1772, %v3136_v31   ;;  %1641 = vst.msk [vmem:[%s3514_s3 + $0x68] sm:$0xff] %vm18_vm15, %v1875_v3 }
 0x155   :  { %v1162_v9 = vpop.xlane.xlu2 %1161  ;;  %1642 = vst.msk [vmem:[%s3514_s3 + $0x70] sm:$0xff] %vm18_vm15, %v1875_v3 }
 0x156   :  { %v3202_v53 = vmax.f32 %v3199_v8, %v1162_v9  ;;  %1643 = vst.msk [vmem:[%s3514_s3 + $0x78] sm:$0xff] %vm18_vm15, %v1875_v3 }
 0x158   :  { %v1201_v16 = vsub.f32 %v3199_v8, %v3202_v53  ;;  %1473 = vst.msk [vmem:[#allocation2 + $0x40] sm:$0xff] %vm18_vm15, %v3202_v53  ;;  %v1170_v32 = vpop.xlane.xlu0 %1169 }
 0x159   :  { %v3211_v63 = vmax.f32 %v3204_v1, %v1170_v32  ;;  %v1026_v32 = vld [vmem:[#allocation4 + $0x50] sm:$0xff] }
 0x15b   :  { %v1081_v60 = vpop.xlane.xlu1 %1080  ;;  %1477 = vst.msk [vmem:[#allocation2 + $0x60] sm:$0xff] %vm18_vm15, %v3211_v63  ;;  %1335 = vperm.xlu0 %1770, %v3211_v63   ;;  %v3570_v8 = vsub.f32 %v3204_v1, %v3211_v63 }
 0x15c   :  { %1315 = vperm.xlu2 %1772, %v3202_v53   ;;  %v1104_v6 = vadd.f32 %v1081_v60, %v1024_v33  ;;  %v3265_v33 = vld [vmem:[#allocation2 + $0x68] sm:$0xff] }
 0x15d   :  { %v1233_v53 = vmul.f32 1.442695, %v3570_v8 }
 0x15e   :  { %1121 = vst.msk [vmem:[#allocation4 + $0x40] sm:$0xff] %vm18_vm15, %v1104_v6 }
 0x163   :  { %v1148_v44 = vpop.xlane.xlu1 %1147  ;;  %v1164_v45 = vpop.xlane.xlu0 %1163 }
 0x164   :  { %v3225_v38 = vmax.f32 %v3220_v10, %v1148_v44  ;;  %v3228_v21 = vmax.f32 %v3222_v24, %v1164_v45  ;;  %v3267_v44 = vld [vmem:[#allocation2 + $0x10] sm:$0xff] }
 0x166   :  { %v1089_v40 = vpop.xlane.xlu2 %1088  ;;  %1466 = vst.msk [vmem:[#allocation2 + $0x8] sm:$0xff] %vm18_vm15, %v3225_v38  ;;  %1280 = vperm.xlu2 %1772, %v3225_v38   ;;  %1320 = vperm.xlu0 %1770, %v3228_v21  }
 0x167   :  { %v1108_v43 = vadd.f32 %v1089_v40, %v1028_v61  ;;  %1474 = vst.msk [vmem:[#allocation2 + $0x48] sm:$0xff] %vm18_vm15, %v3228_v21 }
 0x169   :  { %1125 = vst.msk [vmem:[#allocation4 + $0x60] sm:$0xff] %vm18_vm15, %v1108_v43 }
 0x16b   :  { %v1067_v26 = vpop.xlane.xlu1 %1066  ;;  %v1091_v11 = vpop.xlane.xlu0 %1090 }
 0x16c   :  { %v1097_v52 = vadd.f32 %v1067_v26, %v1017_v54  ;;  %v1109_v50 = vadd.f32 %v1091_v11, %v1029_v59  ;;  %v3286_v26 = vld [vmem:[#allocation2 + $0x50] sm:$0xff]  ;;  %v3288_v11 = vld [vmem:[#allocation2 + $0x18] sm:$0xff] }
 0x16e   :  { %1114 = vst.msk [vmem:[#allocation4 + $0x8] sm:$0xff] %vm18_vm15, %v1097_v52 }
 0x16f   :  { %v1156_v51 = vpop.xlane.xlu2 %1155  ;;  %1126 = vst.msk [vmem:[#allocation4 + $0x68] sm:$0xff] %vm18_vm15, %v1109_v50 }
 0x170   :  { %v3245_v0 = vmax.f32 %v3241_v58, %v1156_v51  ;;  %v1018_v51 = vld [vmem:[#allocation4 + $0x10] sm:$0xff] }
 0x172   :  { %1470 = vst.msk [vmem:[#allocation2 + $0x28] sm:$0xff] %vm18_vm15, %v3245_v0  ;;  %1300 = vperm.xlu1 %1771, %v3245_v0  }
 0x173   :  { %v1075_v17 = vpop.xlane.xlu1 %1074 }
 0x174   :  { %v1158_v22 = vpop.xlane.xlu0 %1157  ;;  %v1101_v15 = vadd.f32 %v1075_v17, %v1021_v20 }
 0x175   :  { %v3256_v46 = vmax.f32 %v3253_v49, %v1158_v22 }
 0x176   :  { %1118 = vst.msk [vmem:[#allocation4 + $0x28] sm:$0xff] %vm18_vm15, %v1101_v15 }
 0x177   :  { %v1083_v25 = vpop.xlane.xlu2 %1082  ;;  %1305 = vperm.xlu2 %1772, %v3256_v46   ;;  %1471 = vst.msk [vmem:[#allocation2 + $0x30] sm:$0xff] %vm18_vm15, %v3256_v46 }
 0x178   :  { %v1105_v9 = vadd.f32 %v1083_v25, %v1025_v41  ;;  %v3314_v41 = vld [vmem:[#allocation2 + $0x70] sm:$0xff] }
 0x17a   :  { %1122 = vst.msk [vmem:[#allocation4 + $0x48] sm:$0xff] %vm18_vm15, %v1105_v9  ;;  %v1030_v9 = vld [vmem:[#allocation4 + $0x70] sm:$0xff] }
 0x17b   :  { %v1172_v60 = vpop.xlane.xlu1 %1171 }
 0x17c   :  { %v1085_v6 = vpop.xlane.xlu0 %1084  ;;  %v3270_v45 = vmax.f32 %v3265_v33, %v1172_v60 }
 0x17d   :  { %v1106_v61 = vadd.f32 %v1085_v6, %v1026_v32  ;;  %v1023_v32 = vld [vmem:[#allocation4 + $0x38] sm:$0xff] }
 0x17e   :  { %1478 = vst.msk [vmem:[#allocation2 + $0x68] sm:$0xff] %vm18_vm15, %v3270_v45  ;;  %1340 = vperm.xlu1 %1771, %v3270_v45  }
 0x17f   :  { %v1150_v40 = vpop.xlane.xlu2 %1149  ;;  %1123 = vst.msk [vmem:[#allocation4 + $0x50] sm:$0xff] %vm18_vm15, %v1106_v61  ;;  %v1022_v61 = vld [vmem:[#allocation4 + $0x30] sm:$0xff] }
 0x180   :  { %v3278_v54 = vmax.f32 %v3267_v44, %v1150_v40 }
 0x182   :  { %1467 = vst.msk [vmem:[#allocation2 + $0x10] sm:$0xff] %vm18_vm15, %v3278_v54  ;;  %1285 = vperm.xlu0 %1770, %v3278_v54  }
 0x183   :  { %v1166_v52 = vpop.xlane.xlu1 %1165 }
 0x184   :  { %v1152_v50 = vpop.xlane.xlu0 %1151  ;;  %v3291_v20 = vmax.f32 %v3286_v26, %v1166_v52 }
 0x185   :  { %v3294_v17 = vmax.f32 %v3288_v11, %v1152_v50 }
 0x186   :  { %1475 = vst.msk [vmem:[#allocation2 + $0x50] sm:$0xff] %vm18_vm15, %v3291_v20  ;;  %1325 = vperm.xlu1 %1771, %v3291_v20  }
 0x187   :  { %v1069_v22 = vpop.xlane.xlu2 %1068  ;;  %1468 = vst.msk [vmem:[#allocation2 + $0x18] sm:$0xff] %vm18_vm15, %v3294_v17 }
 0x188   :  { %v1098_v25 = vadd.f32 %v1069_v22, %v1018_v51  ;;  %v3310_v51 = vld [vmem:[#allocation2 + $0x38] sm:$0xff] }
 0x189   :  { %v3312_v22 = vld [vmem:[#allocation2 + $0x78] sm:$0xff] }
 0x18a   :  { %1115 = vst.msk [vmem:[#allocation4 + $0x10] sm:$0xff] %vm18_vm15, %v1098_v25 }
 0x18b   :  { %v1093_v60 = vpop.xlane.xlu1 %1092 }
 0x18c   :  { %v1079_v6 = vpop.xlane.xlu0 %1078  ;;  %v1110_v40 = vadd.f32 %v1093_v60, %v1030_v9 }
 0x18d   :  { %v1103_v52 = vadd.f32 %v1079_v6, %v1023_v32 }
 0x18e   :  { %1127 = vst.msk [vmem:[#allocation4 + $0x70] sm:$0xff] %vm18_vm15, %v1110_v40  ;;  %1290 = vperm.xlu1 %1771, %v3294_v17   ;;  %v1027_v40 = vld [vmem:[#allocation4 + $0x58] sm:$0xff] }
 0x18f   :  { %v1077_v50 = vpop.xlane.xlu2 %1076  ;;  %1120 = vst.msk [vmem:[#allocation4 + $0x38] sm:$0xff] %vm18_vm15, %v1103_v52 }
 0x190   :  { %v1102_v43 = vadd.f32 %v1077_v50, %v1022_v61  ;;  %v1019_v50 = vld [vmem:[#allocation4 + $0x18] sm:$0xff] }
 0x192   :  { %1119 = vst.msk [vmem:[#allocation4 + $0x30] sm:$0xff] %vm18_vm15, %v1102_v43 }
 0x193   :  { %v1160_v25 = vpop.xlane.xlu1 %1159 }
 0x194   :  { %v1176_v15 = vpop.xlane.xlu0 %1175  ;;  %v3317_v9 = vmax.f32 %v3310_v51, %v1160_v25 }
 0x195   :  { %v3320_v32 = vmax.f32 %v3312_v22, %v1176_v15 }
 0x196   :  { %1472 = vst.msk [vmem:[#allocation2 + $0x38] sm:$0xff] %vm18_vm15, %v3317_v9  ;;  %1310 = vperm.xlu1 %1771, %v3317_v9  }
 0x197   :  { %v1174_v60 = vpop.xlane.xlu2 %1173  ;;  %1350 = vperm.xlu0 %1770, %v3320_v32   ;;  %1480 = vst.msk [vmem:[#allocation2 + $0x78] sm:$0xff] %vm18_vm15, %v3320_v32 }
 0x198   :  { %v3331_v61 = vmax.f32 %v3314_v41, %v1174_v60 }
 0x19a   :  { %1479 = vst.msk [vmem:[#allocation2 + $0x70] sm:$0xff] %vm18_vm15, %v3331_v61  ;;  %1345 = vperm.xlu2 %1772, %v3331_v61  }
 0x19b   :  { %v1087_v52 = vpop.xlane.xlu1 %1086 }
 0x19c   :  { %v1107_v25 = vadd.f32 %v1087_v52, %v1027_v40  ;;  %v3367_v40 = vld [vmem:[#allocation2 + $0x58] sm:$0xff] }
 0x19e   :  { %1124 = vst.msk [vmem:[#allocation4 + $0x58] sm:$0xff] %vm18_vm15, %v1107_v25  ;;  %v1031_v25 = vld [vmem:[#allocation4 + $0x78] sm:$0xff] }
 0x19f   :  { %v1071_v60 = vpop.xlane.xlu2 %1070 }
 0x1a0   :  { %v1099_v43 = vadd.f32 %v1071_v60, %v1019_v50 }
 0x1a2   :  { %1116 = vst.msk [vmem:[#allocation4 + $0x18] sm:$0xff] %vm18_vm15, %v1099_v43 }
 0x1a7   :  { %v1168_v43 = vpop.xlane.xlu2 %1167 }
 0x1a8   :  { %v3385_v52 = vmax.f32 %v3367_v40, %v1168_v43 }
 0x1aa   :  { %1476 = vst.msk [vmem:[#allocation2 + $0x58] sm:$0xff] %vm18_vm15, %v3385_v52  ;;  %1330 = vperm.xlu2 %1772, %v3385_v52  }
 0x1af   :  { %v1095_v60 = vpop.xlane.xlu2 %1094 }
 0x1b0   :  { %v1111_v43 = vadd.f32 %v1095_v60, %v1031_v25 }
 0x1b2   :  { %1128 = vst.msk [vmem:[#allocation4 + $0x78] sm:$0xff] %vm18_vm15, %v1111_v43 }
 0x1b3   :  { %v1276_v15 = vpop.permute.xlu1 %1275 }
 0x1b4   :  { %v1353_v6 = vsub.f32 %v2400_v30, %v1276_v15 }
 0x1b6   :  { %v1369_v59 = vmul.f32 1.442695, %v1353_v6 }
 0x1b7   :  { %v1296_v50 = vpop.permute.xlu2 %1295 }
 0x1b8   :  { %1805 = vpow2.f32 %v1369_v59  ;;  %v1357_v62 = vsub.f32 %v2398_v47, %v1296_v50 }
 0x1ba   :  { %v1377_v3 = vmul.f32 1.442695, %v1357_v62 }
 0x1be   :  { %v1806_v4 = vpop.eup %1805 }
 0x1bf   :  { %v1316_v29 = vpop.permute.xlu2 %1315 }
 0x1c0   :  { %v1361_v55 = vsub.f32 %v2669_v57, %v1316_v29  ;;  %1401 = vadd.xlane.f32.xlu1 %v1806_v4 }
 0x1c2   :  { %v1385_v42 = vmul.f32 1.442695, %v1361_v55 }
 0x1c4   :  { %1807 = vpow2.f32 %v1385_v42 }
 0x1c5   :  { %1809 = vpow2.f32 %v1377_v3 }
 0x1c7   :  { %v1281_v37 = vpop.permute.xlu2 %1280 }
 0x1c8   :  { %v1354_v60 = vsub.f32 %v2781_v34, %v1281_v37 }
 0x1ca   :  { %v1808_v25 = vpop.eup %1807  ;;  %v1371_v30 = vmul.f32 1.442695, %v1354_v60 }
 0x1cb   :  { %1417 = vadd.xlane.f32.xlu0 %v1808_v25  ;;  %v1810_v6 = vpop.eup %1809 }
 0x1cc   :  { %1811 = vpow2.f32 %v1371_v30 }
 0x1cd   :  { %v1336_v15 = vpop.permute.xlu0 %1335 }
 0x1ce   :  { %v1365_v59 = vsub.f32 %v2685_v7, %v1336_v15 }
 0x1d0   :  { %v1393_v43 = vmul.f32 1.442695, %v1365_v59 }
 0x1d1   :  { %v1306_v42 = vpop.permute.xlu2 %1305 }
 0x1d2   :  { %1813 = vpow2.f32 %v1393_v43  ;;  %v1812_v57 = vpop.eup %1811  ;;  %v1359_v37 = vsub.f32 %v2935_v36, %v1306_v42 }
 0x1d3   :  { %1409 = vadd.xlane.f32.xlu2 %v1810_v6 }
 0x1d4   :  { %v1381_v4 = vmul.f32 1.442695, %v1359_v37 }
 0x1d8   :  { %v1321_v55 = vpop.permute.xlu0 %1320  ;;  %v1814_v47 = vpop.eup %1813 }
 0x1d9   :  { %v1362_v62 = vsub.f32 %v2783_v39, %v1321_v55  ;;  %1425 = vadd.xlane.f32.xlu1 %v1814_v47 }
 0x1db   :  { %1403 = vadd.xlane.f32.xlu2 %v1812_v57  ;;  %v1387_v34 = vmul.f32 1.442695, %v1362_v62 }
 0x1dd   :  { %1815 = vpow2.f32 %v1387_v34 }
 0x1de   :  { %1817 = vpow2.f32 %v1381_v4 }
 0x1e3   :  { %v1816_v29 = vpop.eup %1815 }
 0x1e4   :  { %v1301_v7 = vpop.permute.xlu1 %1300  ;;  %1419 = vadd.xlane.f32.xlu1 %v1816_v29  ;;  %v1818_v25 = vpop.eup %1817 }
 0x1e5   :  { %v1358_v50 = vsub.f32 %v2873_v48, %v1301_v7 }
 0x1e7   :  { %v1379_v3 = vmul.f32 1.442695, %v1358_v50 }
 0x1e9   :  { %1819 = vpow2.f32 %v1379_v3 }
 0x1ec   :  { %1413 = vadd.xlane.f32.xlu1 %v1818_v25 }
 0x1ef   :  { %v1820_v60 = vpop.eup %1819 }
 0x1f0   :  { %1411 = vadd.xlane.f32.xlu0 %v1820_v60  ;;  %v1341_v39 = vpop.permute.xlu1 %1340 }
 0x1f4   :  { %v1286_v30 = vpop.permute.xlu0 %1285  ;;  %v1346_v43 = vpop.permute.xlu2 %1345 }
 0x1f5   :  { %v1355_v15 = vsub.f32 %v2997_v2, %v1286_v30  ;;  %v1367_v4 = vsub.f32 %v3059_v27, %v1346_v43  ;;  %v1366_v30 = vsub.f32 %v2798_v14, %v1341_v39  ;;  %v1225_v39 = vmul.f32 1.442695, %v1201_v16 }
 0x1f7   :  { %v1373_v59 = vmul.f32 1.442695, %v1355_v15  ;;  %v1397_v60 = vmul.f32 1.442695, %v1367_v4  ;;  %v1395_v27 = vmul.f32 1.442695, %v1366_v30 }
 0x1f8   :  { %v1326_v36 = vpop.permute.xlu1 %1325  ;;  %v1253_v30 = vld [vmem:[#allocation3 + $0x60] sm:$0xff] }
 0x1f9   :  { %1821 = vpow2.f32 %v1373_v59  ;;  %v1363_v6 = vsub.f32 %v2971_v18, %v1326_v36  ;;  %v1209_v36 = vmul.f32 1.442695, %v1193_v28 }
 0x1fb   :  { %v1389_v57 = vmul.f32 1.442695, %v1363_v6  ;;  %v1241_v6 = vld [vmem:[#allocation3] sm:$0xff] }
 0x1fd   :  { %1823 = vpow2.f32 %v1389_v57 }
 0x1ff   :  { %v1822_v48 = vpop.eup %1821 }
 0x200   :  { %1405 = vadd.xlane.f32.xlu0 %v1822_v48  ;;  %v1291_v55 = vpop.permute.xlu1 %1290 }
 0x201   :  { %v1356_v47 = vsub.f32 %v3028_v5, %v1291_v55  ;;  %v3569_v55 = vsub.f32 %v3125_v56, %v3136_v31  ;;  %v1245_v31 = vld [vmem:[#allocation3 + $0x20] sm:$0xff] }
 0x203   :  { %v1824_v62 = vpop.eup %1823  ;;  %v1375_v34 = vmul.f32 1.442695, %v1356_v47  ;;  %v1217_v47 = vmul.f32 1.442695, %v3569_v55 }
 0x204   :  { %v1331_v42 = vpop.permute.xlu2 %1330  ;;  %1421 = vadd.xlane.f32.xlu2 %v1824_v62 }
 0x205   :  { %v1364_v37 = vsub.f32 %v3095_v13, %v1331_v42  ;;  %1825 = vpow2.f32 %v1375_v34  ;;  %v3571_v34 = vsub.f32 %v3220_v10, %v3225_v38  ;;  %v3572_v10 = vsub.f32 %v3222_v24, %v3228_v21 }
 0x206   :  { %v3573_v24 = vsub.f32 %v3253_v49, %v3256_v46  ;;  %v1247_v49 = vld [vmem:[#allocation3 + $0x30] sm:$0xff] }
 0x207   :  { %v1391_v2 = vmul.f32 1.442695, %v1364_v37  ;;  %v1211_v37 = vmul.f32 1.442695, %v3571_v34  ;;  %v1227_v38 = vmul.f32 1.442695, %v3572_v10  ;;  %v3578_v10 = vsub.f32 %v3367_v40, %v3385_v52 }
 0x208   :  { %v1311_v18 = vpop.permute.xlu1 %1310  ;;  %v1221_v21 = vmul.f32 1.442695, %v3573_v24  ;;  %v1244_v40 = vld [vmem:[#allocation3 + $0x18] sm:$0xff]  ;;  %v3581_v52 = vsub.f32 %v3314_v41, %v3331_v61 }
 0x209   :  { %1827 = vpow2.f32 %v1391_v2  ;;  %v1351_v29 = vpop.permute.xlu0 %1350  ;;  %v1360_v7 = vsub.f32 %v3061_v19, %v1311_v18  ;;  %v1248_v41 = vld [vmem:[#allocation3 + $0x38] sm:$0xff] }
 0x20a   :  { %v1368_v50 = vsub.f32 %v3078_v35, %v1351_v29 }
 0x20b   :  { %v1826_v3 = vpop.eup %1825  ;;  %v1383_v25 = vmul.f32 1.442695, %v1360_v7  ;;  %v1484_v7 = vld [vmem:[#allocation2] sm:$0xff] }
 0x20c   :  { %v1399_v5 = vmul.f32 1.442695, %v1368_v50  ;;  %1407 = vadd.xlane.f32.xlu1 %v1826_v3  ;;  %v1564_v3 = vld [vmem:[#allocation4] sm:$0xff] }
 0x20d   :  { %1829 = vpow2.f32 %v1383_v25 }
 0x20e   :  { %1831 = vpow2.f32 %v1399_v5 }
 0x20f   :  { %v1828_v13 = vpop.eup %1827  ;;  %1833 = vpow2.f32 %v1397_v60  ;;  %v1242_v60 = vld [vmem:[#allocation3 + $0x8] sm:$0xff] }
 0x210   :  { %1423 = vadd.xlane.f32.xlu0 %v1828_v13  ;;  %1835 = vpow2.f32 %v1395_v27 }
 0x211   :  { %1837 = vpow2.f32 %v1209_v36 }
 0x212   :  { %1839 = vpow2.f32 %v1225_v39 }
 0x213   :  { %v1830_v15 = vpop.eup %1829  ;;  %1841 = vpow2.f32 %v1217_v47 }
 0x214   :  { %v1832_v59 = vpop.eup %1831  ;;  %1415 = vadd.xlane.f32.xlu2 %v1830_v15 }
 0x215   :  { %1431 = vadd.xlane.f32.xlu1 %v1832_v59  ;;  %v1834_v19 = vpop.eup %1833 }
 0x216   :  { %v1836_v35 = vpop.eup %1835 }
 0x217   :  { %v1838_v14 = vpop.eup %1837 }
 0x218   :  { %1429 = vadd.xlane.f32.xlu0 %v1834_v19  ;;  %v1257_v43 = vmul.f32 %v1838_v14, %v1241_v6  ;;  %v1840_v62 = vpop.eup %1839  ;;  %v3574_v14 = vsub.f32 %v3241_v58, %v3245_v0  ;;  %v1250_v6 = vld [vmem:[#allocation3 + $0x48] sm:$0xff] }
 0x219   :  { %v1265_v12 = vmul.f32 %v1840_v62, %v1249_v23  ;;  %v1842_v56 = vpop.eup %1841  ;;  %v1246_v23 = vld [vmem:[#allocation3 + $0x28] sm:$0xff] }
 0x21a   :  { %v1261_v4 = vmul.f32 %v1842_v56, %v1245_v31  ;;  %v1219_v39 = vmul.f32 1.442695, %v3574_v14  ;;  %v1485_v58 = vld [vmem:[#allocation2 + $0x8] sm:$0xff]  ;;  %v3575_v31 = vsub.f32 %v3267_v44, %v3278_v54  ;;  %v1256_v14 = vld [vmem:[#allocation3 + $0x78] sm:$0xff] }
 0x21c   :  { %1427 = vadd.xlane.f32.xlu2 %v1836_v35 }
 0x233   :  { %v1402_v57 = vpop.xlane.xlu1 %1401 }
 0x234   :  { %v1433_v48 = vadd.f32 %v1402_v57, %v1257_v43 }
 0x236   :  { %1449 = vst.msk [vmem:[#allocation3] sm:$0xff] %vm18_vm15, %v1433_v48 }
 0x23d   :  { %v1500_v28 = vld [vmem:[#allocation3] sm:$0xff] }
 0x23e   :  { %v1418_v42 = vpop.xlane.xlu0 %1417  ;;  %1843 = vlog2.f32 %v1500_v28 }
 0x23f   :  { %v1441_v16 = vadd.f32 %v1418_v42, %v1265_v12  ;;  %1845 = vpow2.f32 %v1233_v53 }
 0x240   :  { %1847 = vpow2.f32 %v1211_v37 }
 0x241   :  { %1457 = vst.msk [vmem:[#allocation3 + $0x40] sm:$0xff] %vm18_vm15, %v1441_v16  ;;  %1849 = vpow2.f32 %v1227_v38  ;;  %v1565_v16 = vld [vmem:[#allocation4 + $0x8] sm:$0xff]  ;;  %v1231_v38 = vmul.f32 1.442695, %v3578_v10 }
 0x242   :  { %1851 = vpow2.f32 %v1221_v21 }
 0x243   :  { %1853 = vpow2.f32 %v1219_v39 }
 0x244   :  { %v1844_v2 = vpop.eup %1843 }
 0x245   :  { %v1517_v18 = vmul.f32 0.6931472, %v1844_v2  ;;  %v1846_v63 = vpop.eup %1845  ;;  %v1213_v2 = vmul.f32 1.442695, %v3575_v31 }
 0x246   :  { %v1410_v29 = vpop.xlane.xlu2 %1409  ;;  %v1848_v25 = vpop.eup %1847  ;;  %v1269_v27 = vmul.f32 %v1846_v63, %v1253_v30 }
 0x247   :  { %v1437_v50 = vadd.f32 %v1410_v29, %v1261_v4  ;;  %v1548_v1 = vadd.f32 %v1517_v18, %v1484_v7  ;;  %v1258_v13 = vmul.f32 %v1848_v25, %v1242_v60  ;;  %v1850_v36 = vpop.eup %1849  ;;  %v3576_v4 = vsub.f32 %v3286_v26, %v3291_v20  ;;  %v1243_v7 = vld [vmem:[#allocation3 + $0x10] sm:$0xff] }
 0x248   :  { %v1266_v43 = vmul.f32 %v1850_v36, %v1250_v6  ;;  %v1852_v47 = vpop.eup %1851  ;;  %v1251_v25 = vld [vmem:[#allocation3 + $0x50] sm:$0xff]  ;;  %v3580_v60 = vsub.f32 %v3312_v22, %v3320_v32  ;;  %v3582_v22 = vsub.f32 %v3265_v33, %v3270_v45 }
 0x249   :  { %1453 = vst.msk [vmem:[#allocation3 + $0x20] sm:$0xff] %vm18_vm15, %v1437_v50  ;;  %v1580_v5 = vsub.f32 %v1548_v1, %v1564_v3  ;;  %v1854_v46 = vpop.eup %1853  ;;  %v1263_v12 = vmul.f32 %v1852_v47, %v1247_v49  ;;  %v1229_v18 = vmul.f32 1.442695, %v3576_v4  ;;  %v3577_v50 = vsub.f32 %v3288_v11, %v3294_v17  ;;  %v1255_v6 = vld [vmem:[#allocation3 + $0x70] sm:$0xff] }
 0x24a   :  { %v1262_v53 = vmul.f32 %v1854_v46, %v1246_v23  ;;  %v3579_v11 = vsub.f32 %v3310_v51, %v3317_v9  ;;  %v1239_v30 = vmul.f32 1.442695, %v3580_v60  ;;  %v1235_v9 = vmul.f32 1.442695, %v3582_v22  ;;  %v1254_v23 = vld [vmem:[#allocation3 + $0x68] sm:$0xff] }
 0x24b   :  { %1628 = vst.msk [vmem:[%s3514_s3] sm:$0xff] %vm18_vm15, %v1580_v5  ;;  %v1215_v44 = vmul.f32 1.442695, %v3577_v50 }
 0x24c   :  { %v1426_v59 = vpop.xlane.xlu1 %1425  ;;  %v1223_v17 = vmul.f32 1.442695, %v3579_v11 }
 0x24d   :  { %v1445_v35 = vadd.f32 %v1426_v59, %v1269_v27  ;;  %v1237_v27 = vmul.f32 1.442695, %v3581_v52  ;;  %v1252_v59 = vld [vmem:[#allocation3 + $0x58] sm:$0xff] }
 0x24e   :  { %v1404_v15 = vpop.xlane.xlu2 %1403 }
 0x24f   :  { %v1434_v19 = vadd.f32 %v1404_v15, %v1258_v13  ;;  %1461 = vst.msk [vmem:[#allocation3 + $0x60] sm:$0xff] %vm18_vm15, %v1445_v35 }
 0x251   :  { %1450 = vst.msk [vmem:[#allocation3 + $0x8] sm:$0xff] %vm18_vm15, %v1434_v19 }
 0x257   :  { %v1420_v48 = vpop.xlane.xlu1 %1419 }
 0x258   :  { %v1501_v57 = vld [vmem:[#allocation3 + $0x8] sm:$0xff]  ;;  %v1442_v55 = vadd.f32 %v1420_v48, %v1266_v43 }
 0x259   :  { %1855 = vlog2.f32 %v1501_v57 }
 0x25a   :  { %1458 = vst.msk [vmem:[#allocation3 + $0x48] sm:$0xff] %vm18_vm15, %v1442_v55  ;;  %1857 = vpow2.f32 %v1213_v2 }
 0x25b   :  { %1859 = vpow2.f32 %v1229_v18 }
 0x25c   :  { %1861 = vpow2.f32 %v1215_v44 }
 0x25d   :  { %1863 = vpow2.f32 %v1231_v38 }
 0x25e   :  { %1865 = vpow2.f32 %v1223_v17 }
 0x25f   :  { %v1856_v62 = vpop.eup %1855  ;;  %v1414_v42 = vpop.xlane.xlu1 %1413  ;;  %1867 = vpow2.f32 %v1239_v30 }
 0x260   :  { %v1519_v28 = vmul.f32 0.6931472, %v1856_v62  ;;  %v1439_v0 = vadd.f32 %v1414_v42, %v1263_v12  ;;  %v1858_v29 = vpop.eup %1857  ;;  %1869 = vpow2.f32 %v1237_v27 }
 0x261   :  { %v1259_v54 = vmul.f32 %v1858_v29, %v1243_v7  ;;  %v1860_v63 = vpop.eup %1859  ;;  %1871 = vpow2.f32 %v1235_v9 }
 0x262   :  { %v1549_v8 = vadd.f32 %v1519_v28, %v1485_v58  ;;  %1455 = vst.msk [vmem:[#allocation3 + $0x30] sm:$0xff] %vm18_vm15, %v1439_v0  ;;  %v1267_v26 = vmul.f32 %v1860_v63, %v1251_v25  ;;  %v1862_v13 = vpop.eup %1861 }
 0x263   :  { %v1412_v34 = vpop.xlane.xlu0 %1411  ;;  %v1864_v15 = vpop.eup %1863  ;;  %v1260_v19 = vmul.f32 %v1862_v13, %v1244_v40 }
 0x264   :  { %v1581_v37 = vsub.f32 %v1549_v8, %v1565_v16  ;;  %v1438_v56 = vadd.f32 %v1412_v34, %v1262_v53  ;;  %v1268_v32 = vmul.f32 %v1864_v15, %v1252_v59  ;;  %v1866_v21 = vpop.eup %1865 }
 0x265   :  { %v1868_v61 = vpop.eup %1867  ;;  %v1264_v43 = vmul.f32 %v1866_v21, %v1248_v41 }
 0x266   :  { %1629 = vst.msk [vmem:[%s3514_s3 + $0x8] sm:$0xff] %vm18_vm15, %v1581_v37  ;;  %v1870_v39 = vpop.eup %1869  ;;  %v1272_v48 = vmul.f32 %v1868_v61, %v1256_v14 }
 0x267   :  { %1454 = vst.msk [vmem:[#allocation3 + $0x28] sm:$0xff] %vm18_vm15, %v1438_v56  ;;  %v1271_v45 = vmul.f32 %v1870_v39, %v1255_v6  ;;  %v1872_v46 = vpop.eup %1871 }
 0x268   :  { %v1270_v12 = vmul.f32 %v1872_v46, %v1254_v23 }
 0x273   :  { %v1406_v1 = vpop.xlane.xlu0 %1405 }
 0x274   :  { %v1435_v3 = vadd.f32 %v1406_v1, %v1259_v54 }
 0x276   :  { %1451 = vst.msk [vmem:[#allocation3 + $0x10] sm:$0xff] %vm18_vm15, %v1435_v3 }
 0x277   :  { %v1422_v20 = vpop.xlane.xlu2 %1421 }
 0x278   :  { %v1443_v5 = vadd.f32 %v1422_v20, %v1267_v26 }
 0x27a   :  { %1459 = vst.msk [vmem:[#allocation3 + $0x50] sm:$0xff] %vm18_vm15, %v1443_v5 }
 0x27f   :  { %v1408_v35 = vpop.xlane.xlu1 %1407 }
 0x280   :  { %v1436_v51 = vadd.f32 %v1408_v35, %v1260_v19 }
 0x282   :  { %1452 = vst.msk [vmem:[#allocation3 + $0x18] sm:$0xff] %vm18_vm15, %v1436_v51 }
 0x283   :  { %v1424_v24 = vpop.xlane.xlu0 %1423 }
 0x284   :  { %v1444_v36 = vadd.f32 %v1424_v24, %v1268_v32 }
 0x286   :  { %1460 = vst.msk [vmem:[#allocation3 + $0x58] sm:$0xff] %vm18_vm15, %v1444_v36 }
 0x287   :  { %v1416_v57 = vpop.xlane.xlu2 %1415 }
 0x288   :  { %v1440_v55 = vadd.f32 %v1416_v57, %v1264_v43  ;;  %v1432_v33 = vpop.xlane.xlu1 %1431 }
 0x289   :  { %v1448_v47 = vadd.f32 %v1432_v33, %v1272_v48 }
 0x28a   :  { %1456 = vst.msk [vmem:[#allocation3 + $0x38] sm:$0xff] %vm18_vm15, %v1440_v55 }
 0x28b   :  { %v1430_v49 = vpop.xlane.xlu0 %1429  ;;  %1464 = vst.msk [vmem:[#allocation3 + $0x78] sm:$0xff] %vm18_vm15, %v1448_v47 }
 0x28c   :  { %v1447_v62 = vadd.f32 %v1430_v49, %v1271_v45 }
 0x28e   :  { %1463 = vst.msk [vmem:[#allocation3 + $0x70] sm:$0xff] %vm18_vm15, %v1447_v62 }
 0x28f   :  { %v1428_v28 = vpop.xlane.xlu2 %1427 }
 0x290   :  { %v1446_v42 = vadd.f32 %v1428_v28, %v1270_v12 }
 0x292   :  { %1462 = vst.msk [vmem:[#allocation3 + $0x68] sm:$0xff] %vm18_vm15, %v1446_v42 }

</bundles_post_ra>
